<compile_context>
chip_gen: v7x
topology: tpu7x:2x2x1
jax: 0.10.0
libtpu: 0.0.40
codegen_flags: <defaults>
</compile_context>

<pallas_src>
import functools
import math

import jax
import jax.numpy as jnp
from jax.experimental import pallas as pl
from jax.experimental.pallas import tpu as pltpu


def _layernorm(y, w, b, eps=1e-5):
    mu = jnp.mean(y, axis=-1, keepdims=True)
    var = jnp.mean(jnp.square(y - mu), axis=-1, keepdims=True)
    return (y - mu) * jax.lax.rsqrt(var + eps) * w + b


# --------------- fused kernel: full encoder stack + tag projection ----------
def encoder_stack_kernel(x_ref,
                         wqkv_ref, bqkv_ref, wo_ref, bo_ref,
                         ln1w_ref, ln1b_ref,
                         w1_ref, b1_ref, w2_ref, b2_ref,
                         ln2w_ref, ln2b_ref,
                         linw_ref, linb_ref,
                         out_ref, act_ref, *, nhead):
    # TODO(synk): dropout is treated as identity (inference / eval mode).
    l = pl.program_id(1)
    nl = pl.num_programs(1)
    bb, S, D = x_ref.shape
    hd = D // nhead
    rows = bb * S
    NT = linw_ref.shape[1]

    # Layer 0 of each batch block: pull the embedding+PE activations into the
    # VMEM-resident carry buffer (no HBM activation traffic after this).
    @pl.when(l == 0)
    def _():
        act_ref[...] = x_ref[...].reshape(rows, D)

    x2 = act_ref[...]                                 # (rows, D) f32
    xb = x2.astype(jnp.bfloat16)

    # --- fused QKV projection: one (rows, D) @ (D, 3D) bf16 MXU matmul ------
    # 1/sqrt(head_dim) is pre-folded into the Q block of wqkv / bqkv.
    qkv = (jnp.dot(xb, wqkv_ref[...], preferred_element_type=jnp.float32)
           + bqkv_ref[...]).astype(jnp.bfloat16)      # single bf16 cast

    q = qkv[:, :D].reshape(bb, S, D)
    k = qkv[:, D:2 * D].reshape(bb, S, D)
    v = qkv[:, 2 * D:].reshape(bb, S, D)

    # causal mask built in-kernel; implicit broadcast over the batch dim.
    row = jax.lax.broadcasted_iota(jnp.int32, (S, S), 0)
    col = jax.lax.broadcasted_iota(jnp.int32, (S, S), 1)
    neg = jnp.where(col > row, jnp.float32(-1e30), jnp.float32(0.0))

    # --- multi-head self attention ------------------------------------------
    # TODO(synk): fold heads into one batched einsum ('bqhd,bkhd->bhqk') once
    # Mosaic dot_general supports multiple / non-leading batch dims; the
    # static per-head loop below is the proven-to-lower path.
    ctx_heads = []
    for h in range(nhead):
        sl = slice(h * hd, (h + 1) * hd)
        s = jnp.einsum('bqd,bkd->bqk', q[:, :, sl], k[:, :, sl],
                       preferred_element_type=jnp.float32)   # (bb, S, S) f32
        s = s + neg
        s = s - jnp.max(s, axis=-1, keepdims=True)
        p = jnp.exp(s)
        p = p * pl.reciprocal(jnp.sum(p, axis=-1, keepdims=True), approx=True)
        ctx_heads.append(
            jnp.einsum('bqk,bkd->bqd', p.astype(jnp.bfloat16), v[:, :, sl],
                       preferred_element_type=jnp.float32))
    ctx = jnp.concatenate(ctx_heads, axis=-1).reshape(rows, D)

    # --- single full-K output projection --------------------------------------
    attn = jnp.dot(ctx.astype(jnp.bfloat16), wo_ref[...],
                   preferred_element_type=jnp.float32) + bo_ref[...]

    # --- residual + LN1, FFN (relu) + residual + LN2 --------------------------
    y = _layernorm(x2 + attn, ln1w_ref[...], ln1b_ref[...])
    ff = jnp.dot(y.astype(jnp.bfloat16), w1_ref[...],
                 preferred_element_type=jnp.float32) + b1_ref[...]
    ff = jnp.maximum(ff, 0.0)
    ff = jnp.dot(ff.astype(jnp.bfloat16), w2_ref[...],
                 preferred_element_type=jnp.float32) + b2_ref[...]
    y = _layernorm(y + ff, ln2w_ref[...], ln2b_ref[...])

    act_ref[...] = y                                  # carry to next layer step

    # Last layer: fused, lane-dense final tag projection straight out of VMEM.
    @pl.when(l == nl - 1)
    def _():
        logits = (jnp.dot(y.astype(jnp.bfloat16), linw_ref[...],
                          preferred_element_type=jnp.float32) + linb_ref[...])
        out_ref[...] = logits.reshape(bb, S, NT)


def _pick_batch_block(B, S, target_rows=512):
    divs = [d for d in range(1, B + 1) if B % d == 0]
    # keep >= 2 batch grid steps when possible (both v7x TensorCores busy)
    cands = [d for d in divs if B // d >= 2] or divs
    meets = [d for d in cands if d * S >= target_rows]
    return min(meets) if meets else max(cands)


def _vmem_limit_bytes(bb, S, D, H, NT):
    rows = bb * S
    w_layer = 2 * (3 * D * D + D * D + 2 * D * H) + 4 * (4 * D + H + 7 * D)
    w_final = 2 * D * NT + 4 * NT
    io_blocks = 4 * rows * D + 4 * rows * NT
    inter = (2 * rows * 3 * D            # qkv bf16
             + 4 * 5 * rows * D          # ctx / residuals / y f32
             + 2 * 4 * bb * S * S        # scores + probs
             + 4 * rows * H              # ffn hidden
             + 4 * rows * D)             # activation carry scratch
    est = 2 * (w_layer + w_final + io_blocks) + inter    # 2x: double buffering
    return int(min(96 * 2 ** 20, max(32 * 2 ** 20, int(est * 1.5))))


def encoder_stack(x, p, nhead):
    B, S, D = x.shape
    L = p["wqkv"].shape[0]
    H = p["w1"].shape[2]
    NT = p["lin_w"].shape[1]
    bb = _pick_batch_block(B, S)
    grid = (B // bb, L)

    batch_map = lambda b, l: (b, 0, 0)
    layer_map = lambda b, l: (l, 0, 0)
    const_map = lambda b, l: (0, 0)

    def wspec(arr):          # stacked per-layer weight, streamed over grid axis 1
        return pl.BlockSpec((None,) + arr.shape[1:], layer_map)

    weight_args = (p["wqkv"], p["bqkv"], p["wo"], p["bo"],
                   p["ln1_w"], p["ln1_b"],
                   p["w1"], p["b1"], p["w2"], p["b2"],
                   p["ln2_w"], p["ln2_b"])

    in_specs = [pl.BlockSpec((bb, S, D), batch_map)]
    in_specs += [wspec(a) for a in weight_args]
    in_specs += [pl.BlockSpec(p["lin_w"].shape, const_map),
                 pl.BlockSpec(p["lin_b"].shape, const_map)]
    out_specs = pl.BlockSpec((bb, S, NT), batch_map)

    return pl.pallas_call(
        functools.partial(encoder_stack_kernel, nhead=nhead),
        out_shape=jax.ShapeDtypeStruct((B, S, NT), jnp.float32),
        grid_spec=pltpu.PrefetchScalarGridSpec(
            num_scalar_prefetch=0, grid=grid,
            in_specs=in_specs, out_specs=out_specs,
            scratch_shapes=[pltpu.VMEM((bb * S, D), jnp.float32)]),
        compiler_params=pltpu.CompilerParams(
            dimension_semantics=("parallel", "arbitrary"),
            vmem_limit_bytes=_vmem_limit_bytes(bb, S, D, H, NT)),
    )(x, *weight_args, p["lin_w"], p["lin_b"])


# ------------- plain-JAX glue: params, PE table, embedding gather -----------
def make_positional_encoding(d_model, max_len):
    position = jnp.arange(max_len, dtype=jnp.float32)[:, None]
    div_term = jnp.exp(jnp.arange(0, d_model, 2, dtype=jnp.float32)
                       * (-math.log(10000.0) / d_model))
    pe = jnp.zeros((max_len, d_model), jnp.float32)
    pe = pe.at[:, 0::2].set(jnp.sin(position * div_term))
    pe = pe.at[:, 1::2].set(jnp.cos(position * div_term))
    return pe                                                   # (max_len, D)


def init_params(key, ntoken, ntag, d_model, nhead, d_hid, nlayers):
    hd = d_model // nhead
    scale = 1.0 / math.sqrt(hd)
    nt_pad = ((ntag + 127) // 128) * 128

    keys = jax.random.split(key, 2 + nlayers)
    emb = jax.random.uniform(keys[0], (ntoken, d_model), jnp.float32, -0.1, 0.1)
    lin_w = jax.random.uniform(keys[1], (d_model, ntag), jnp.float32, -0.1, 0.1)
    lin_w_pad = jnp.zeros((d_model, nt_pad), jnp.float32).at[:, :ntag].set(lin_w)

    wqkv, bqkv, wo, bo, w1, b1, w2, b2 = ([] for _ in range(8))
    for l in range(nlayers):
        k = jax.random.split(keys[2 + l], 8)
        wq = 0.05 * jax.random.normal(k[0], (d_model, 3 * d_model), jnp.float32)
        bq = 0.05 * jax.random.normal(k[1], (1, 3 * d_model), jnp.float32)
        # fold 1/sqrt(head_dim) query scale into the Q block of W_qkv / b_qkv
        wq = wq.at[:, :d_model].multiply(scale)
        bq = bq.at[:, :d_model].multiply(scale)
        wqkv.append(wq); bqkv.append(bq)
        wo.append(0.05 * jax.random.normal(k[2], (d_model, d_model), jnp.float32))
        bo.append(0.05 * jax.random.normal(k[3], (1, d_model), jnp.float32))
        w1.append(0.05 * jax.random.normal(k[4], (d_model, d_hid), jnp.float32))
        b1.append(0.05 * jax.random.normal(k[5], (1, d_hid), jnp.float32))
        w2.append(0.05 * jax.random.normal(k[6], (d_hid, d_model), jnp.float32))
        b2.append(0.05 * jax.random.normal(k[7], (1, d_model), jnp.float32))

    stack = lambda xs, dt=jnp.float32: jnp.stack(xs).astype(dt)
    return {
        "embedding": emb,
        "lin_w": lin_w_pad.astype(jnp.bfloat16),       # bf16, lane-padded to 128
        "lin_b": jnp.zeros((1, nt_pad), jnp.float32),
        # per-layer weights stacked with a leading layer axis (streamed by grid)
        "wqkv": stack(wqkv, jnp.bfloat16), "bqkv": stack(bqkv),
        "wo": stack(wo, jnp.bfloat16), "bo": stack(bo),
        "w1": stack(w1, jnp.bfloat16), "b1": stack(b1),
        "w2": stack(w2, jnp.bfloat16), "b2": stack(b2),
        "ln1_w": jnp.ones((nlayers, 1, d_model), jnp.float32),
        "ln1_b": jnp.zeros((nlayers, 1, d_model), jnp.float32),
        "ln2_w": jnp.ones((nlayers, 1, d_model), jnp.float32),
        "ln2_b": jnp.zeros((nlayers, 1, d_model), jnp.float32),
    }


def transformer_forward(params, src, pe, *, nhead, ntag):
    # src: (S, B) int32 token ids (seq-first, like the PyTorch module).
    S, B = src.shape
    D = params["embedding"].shape[1]
    # TODO(synk): embedding gather stays in plain JAX (data-dependent gather);
    # sqrt(D) scale + positional encoding fused here; dropout == identity.
    x = params["embedding"][src.T] * jnp.float32(math.sqrt(D)) + pe[:S][None, :, :]
    logits = encoder_stack(x, params, nhead)          # (B, S, NT_pad)
    # slice off lane padding, back to seq-first (S, B, ntag)
    return logits[:, :, :ntag].transpose(1, 0, 2)


if __name__ == "__main__":
    # Small shapes implied by the module's forward: src is (seq, batch) int.
    # d_model chosen lane-friendly (128) so MXU tiles are fully utilized.
    ntoken, ntag = 50, 16
    d_model, nhead, d_hid, nlayers = 128, 4, 256, 2
    S, B = 16, 4

    key = jax.random.PRNGKey(0)
    kp, ks = jax.random.split(key)
    params = init_params(kp, ntoken, ntag, d_model, nhead, d_hid, nlayers)
    src = jax.random.randint(ks, (S, B), 0, ntoken, dtype=jnp.int32)
    pe = make_positional_encoding(d_model, max_len=64)

    fwd = jax.jit(functools.partial(transformer_forward, nhead=nhead, ntag=ntag))
    out = jax.block_until_ready(fwd(params, src, pe))

    assert out.shape == (S, B, ntag), out.shape
    assert bool(jnp.all(jnp.isfinite(out)))
    print("KERNEL_OK")
</pallas_src>

<mosaic_0001>
module attributes {stable_mosaic.version = 11 : i64} {
  func.func @encoder_stack_kernel(%arg0: i32, %arg1: i32, %arg2: memref<2x16x128xf32, #tpu.memory_space<vmem>>, %arg3: memref<1x128x384xbf16, #tpu.memory_space<vmem>>, %arg4: memref<1x1x384xf32, #tpu.memory_space<vmem>>, %arg5: memref<1x128x128xbf16, #tpu.memory_space<vmem>>, %arg6: memref<1x1x128xf32, #tpu.memory_space<vmem>>, %arg7: memref<1x1x128xf32, #tpu.memory_space<vmem>>, %arg8: memref<1x1x128xf32, #tpu.memory_space<vmem>>, %arg9: memref<1x128x256xbf16, #tpu.memory_space<vmem>>, %arg10: memref<1x1x256xf32, #tpu.memory_space<vmem>>, %arg11: memref<1x256x128xbf16, #tpu.memory_space<vmem>>, %arg12: memref<1x1x128xf32, #tpu.memory_space<vmem>>, %arg13: memref<1x1x128xf32, #tpu.memory_space<vmem>>, %arg14: memref<1x1x128xf32, #tpu.memory_space<vmem>>, %arg15: memref<128x128xbf16, #tpu.memory_space<vmem>>, %arg16: memref<1x128xf32, #tpu.memory_space<vmem>>, %arg17: memref<2x16x128xf32, #tpu.memory_space<vmem>>, %arg18: memref<32x128xf32, #tpu.memory_space<vmem>>) attributes {dimension_semantics = [#tpu.dimension_semantics<parallel>, #tpu.dimension_semantics<arbitrary>], iteration_bounds = array<i64: 2, 2>, scalar_prefetch = 0 : i64, scratch_operands = 1 : i64, tpu.core_type = #tpu.core_type<tc>, window_params = [{transform_indices = @transform_0, window_bounds = array<i64: 2, 16, 128>}, {transform_indices = @transform_1, window_bounds = array<i64: 1, 128, 384>}, {transform_indices = @transform_2, window_bounds = array<i64: 1, 1, 384>}, {transform_indices = @transform_3, window_bounds = array<i64: 1, 128, 128>}, {transform_indices = @transform_4, window_bounds = array<i64: 1, 1, 128>}, {transform_indices = @transform_5, window_bounds = array<i64: 1, 1, 128>}, {transform_indices = @transform_6, window_bounds = array<i64: 1, 1, 128>}, {transform_indices = @transform_7, window_bounds = array<i64: 1, 128, 256>}, {transform_indices = @transform_8, window_bounds = array<i64: 1, 1, 256>}, {transform_indices = @transform_9, window_bounds = array<i64: 1, 256, 128>}, {transform_indices = @transform_10, window_bounds = array<i64: 1, 1, 128>}, {transform_indices = @transform_11, window_bounds = array<i64: 1, 1, 128>}, {transform_indices = @transform_12, window_bounds = array<i64: 1, 1, 128>}, {pipeline_mode = #tpu.pipeline_mode<synchronous>, transform_indices = @transform_13, window_bounds = array<i64: 128, 128>}, {pipeline_mode = #tpu.pipeline_mode<synchronous>, transform_indices = @transform_14, window_bounds = array<i64: 1, 128>}, {transform_indices = @transform_15, window_bounds = array<i64: 2, 16, 128>}]} {
    %c0_i32 = arith.constant 0 : i32
    %0 = arith.cmpi eq, %arg1, %c0_i32 : i32
    %1 = arith.extui %0 : i1 to i32
    %c0_i32_0 = arith.constant 0 : i32
    %2 = arith.cmpi ne, %1, %c0_i32_0 : i32
    scf.if %2 {
      %c0_73 = arith.constant 0 : index
      %c0_74 = arith.constant 0 : index
      %c0_75 = arith.constant 0 : index
      %187 = vector.load %arg2[%c0_73, %c0_74, %c0_75] : memref<2x16x128xf32, #tpu.memory_space<vmem>>, vector<2x16x128xf32>
      %188 = vector.shape_cast %187 : vector<2x16x128xf32> to vector<32x128xf32>
      %c0_76 = arith.constant 0 : index
      %c0_77 = arith.constant 0 : index
      %189 = vector.load %arg18[%c0_76, %c0_77] : memref<32x128xf32, #tpu.memory_space<vmem>>, vector<32x128xf32>
      tpu.vector_store %arg18[%c0_76, %c0_77], %188 {strides = array<i32>} : memref<32x128xf32, #tpu.memory_space<vmem>>, vector<32x128xf32>,
    } else {
    }
    %c0 = arith.constant 0 : index
    %c0_1 = arith.constant 0 : index
    %3 = vector.load %arg18[%c0, %c0_1] : memref<32x128xf32, #tpu.memory_space<vmem>>, vector<32x128xf32>
    %4 = arith.truncf %3 : vector<32x128xf32> to vector<32x128xbf16>
    %c0_2 = arith.constant 0 : index
    %c0_3 = arith.constant 0 : index
    %c0_4 = arith.constant 0 : index
    %5 = vector.load %arg3[%c0_2, %c0_3, %c0_4] : memref<1x128x384xbf16, #tpu.memory_space<vmem>>, vector<1x128x384xbf16>
    %6 = vector.shape_cast %5 : vector<1x128x384xbf16> to vector<128x384xbf16>
    %cst = arith.constant dense<0.000000e+00> : vector<32x384xf32>
    %7 = tpu.matmul %4, %6, %cst {dimension_numbers = #tpu.dot_dimension_numbers<[1], [0], [0], [1], [0, 0, 1, 1], [], []>} : vector<32x128xbf16>, vector<128x384xbf16>, vector<32x384xf32> -> vector<32x384xf32>
    %c0_5 = arith.constant 0 : index
    %c0_6 = arith.constant 0 : index
    %c0_7 = arith.constant 0 : index
    %8 = vector.load %arg4[%c0_5, %c0_6, %c0_7] : memref<1x1x384xf32, #tpu.memory_space<vmem>>, vector<1x1x384xf32>
    %9 = vector.shape_cast %8 : vector<1x1x384xf32> to vector<1x384xf32>
    %10 = vector.broadcast %9 : vector<1x384xf32> to vector<32x384xf32>
    %11 = arith.addf %7, %10 : vector<32x384xf32>
    %12 = arith.truncf %11 : vector<32x384xf32> to vector<32x384xbf16>
    %13 = vector.extract_strided_slice %12 {offsets = [0, 0], sizes = [32, 128], strides = [1, 1]} : vector<32x384xbf16> to vector<32x128xbf16>
    %14 = vector.shape_cast %13 : vector<32x128xbf16> to vector<2x16x128xbf16>
    %15 = vector.extract_strided_slice %12 {offsets = [0, 128], sizes = [32, 128], strides = [1, 1]} : vector<32x384xbf16> to vector<32x128xbf16>
    %16 = vector.shape_cast %15 : vector<32x128xbf16> to vector<2x16x128xbf16>
    %17 = vector.extract_strided_slice %12 {offsets = [0, 256], sizes = [32, 128], strides = [1, 1]} : vector<32x384xbf16> to vector<32x128xbf16>
    %18 = vector.shape_cast %17 : vector<32x128xbf16> to vector<2x16x128xbf16>
    %19 = tpu.iota {dimensions = array<i32: 0>} : vector<16x16xi32>
    %20 = tpu.iota {dimensions = array<i32: 1>} : vector<16x16xi32>
    %21 = arith.cmpi sgt, %20, %19 : vector<16x16xi32>
    %cst_8 = arith.constant -1.000000e+30 : f32
    %cst_9 = arith.constant 0.000000e+00 : f32
    %22 = vector.broadcast %cst_8 : f32 to vector<16x16xf32>
    %23 = vector.broadcast %cst_9 : f32 to vector<16x16xf32>
    %24 = arith.select %21, %22, %23 : vector<16x16xi1>, vector<16x16xf32>
    %25 = vector.extract_strided_slice %14 {offsets = [0, 0, 0], sizes = [2, 16, 32], strides = [1, 1, 1]} : vector<2x16x128xbf16> to vector<2x16x32xbf16>
    %26 = vector.extract_strided_slice %16 {offsets = [0, 0, 0], sizes = [2, 16, 32], strides = [1, 1, 1]} : vector<2x16x128xbf16> to vector<2x16x32xbf16>
    "tpu.trace_start"() <{level = 10 : i32, message = "bqd,bkd->bqk"}> : () -> ()
    %cst_10 = arith.constant dense<0.000000e+00> : vector<2x16x16xf32>
    %27 = tpu.matmul %25, %26, %cst_10 {dimension_numbers = #tpu.dot_dimension_numbers<[2], [2], [1], [1], [0, 0, 0, 1, 1, 1], [0], [0]>} : vector<2x16x32xbf16>, vector<2x16x32xbf16>, vector<2x16x16xf32> -> vector<2x16x16xf32>
    "tpu.trace_stop"() : () -> ()
    %28 = vector.shape_cast %24 : vector<16x16xf32> to vector<1x16x16xf32>
    %29 = vector.broadcast %28 : vector<1x16x16xf32> to vector<2x16x16xf32>
    %30 = arith.addf %27, %29 : vector<2x16x16xf32>
    %cst_11 = arith.constant dense<0xFF800000> : vector<2x16xf32>
    %31 = vector.multi_reduction <maximumf>, %30, %cst_11 [2] : vector<2x16x16xf32> to vector<2x16xf32>
    %32 = vector.shape_cast %31 : vector<2x16xf32> to vector<2x16x1xf32>
    %33 = vector.broadcast %32 : vector<2x16x1xf32> to vector<2x16x16xf32>
    %34 = arith.subf %30, %33 : vector<2x16x16xf32>
    %35 = math.exp %34 : vector<2x16x16xf32>
    %cst_12 = arith.constant dense<0.000000e+00> : vector<2x16xf32>
    %36 = vector.multi_reduction <add>, %35, %cst_12 [2] : vector<2x16x16xf32> to vector<2x16xf32>
    %37 = vector.shape_cast %36 : vector<2x16xf32> to vector<2x16x1xf32>
    %38 = tpu.reciprocal %37 {approx = true} : vector<2x16x1xf32> -> vector<2x16x1xf32>
    %39 = vector.broadcast %38 : vector<2x16x1xf32> to vector<2x16x16xf32>
    %40 = arith.mulf %35, %39 : vector<2x16x16xf32>
    %41 = arith.truncf %40 : vector<2x16x16xf32> to vector<2x16x16xbf16>
    %42 = vector.extract_strided_slice %18 {offsets = [0, 0, 0], sizes = [2, 16, 32], strides = [1, 1, 1]} : vector<2x16x128xbf16> to vector<2x16x32xbf16>
    "tpu.trace_start"() <{level = 10 : i32, message = "bqk,bkd->bqd"}> : () -> ()
    %cst_13 = arith.constant dense<0.000000e+00> : vector<2x16x32xf32>
    %43 = tpu.matmul %41, %42, %cst_13 {dimension_numbers = #tpu.dot_dimension_numbers<[2], [1], [1], [2], [0, 0, 0, 1, 1, 2], [0], [0]>} : vector<2x16x16xbf16>, vector<2x16x32xbf16>, vector<2x16x32xf32> -> vector<2x16x32xf32>
    "tpu.trace_stop"() : () -> ()
    %44 = vector.extract_strided_slice %14 {offsets = [0, 0, 32], sizes = [2, 16, 32], strides = [1, 1, 1]} : vector<2x16x128xbf16> to vector<2x16x32xbf16>
    %45 = vector.extract_strided_slice %16 {offsets = [0, 0, 32], sizes = [2, 16, 32], strides = [1, 1, 1]} : vector<2x16x128xbf16> to vector<2x16x32xbf16>
    "tpu.trace_start"() <{level = 10 : i32, message = "bqd,bkd->bqk"}> : () -> ()
    %cst_14 = arith.constant dense<0.000000e+00> : vector<2x16x16xf32>
    %46 = tpu.matmul %44, %45, %cst_14 {dimension_numbers = #tpu.dot_dimension_numbers<[2], [2], [1], [1], [0, 0, 0, 1, 1, 1], [0], [0]>} : vector<2x16x32xbf16>, vector<2x16x32xbf16>, vector<2x16x16xf32> -> vector<2x16x16xf32>
    "tpu.trace_stop"() : () -> ()
    %47 = vector.shape_cast %24 : vector<16x16xf32> to vector<1x16x16xf32>
    %48 = vector.broadcast %47 : vector<1x16x16xf32> to vector<2x16x16xf32>
    %49 = arith.addf %46, %48 : vector<2x16x16xf32>
    %cst_15 = arith.constant dense<0xFF800000> : vector<2x16xf32>
    %50 = vector.multi_reduction <maximumf>, %49, %cst_15 [2] : vector<2x16x16xf32> to vector<2x16xf32>
    %51 = vector.shape_cast %50 : vector<2x16xf32> to vector<2x16x1xf32>
    %52 = vector.broadcast %51 : vector<2x16x1xf32> to vector<2x16x16xf32>
    %53 = arith.subf %49, %52 : vector<2x16x16xf32>
    %54 = math.exp %53 : vector<2x16x16xf32>
    %cst_16 = arith.constant dense<0.000000e+00> : vector<2x16xf32>
    %55 = vector.multi_reduction <add>, %54, %cst_16 [2] : vector<2x16x16xf32> to vector<2x16xf32>
    %56 = vector.shape_cast %55 : vector<2x16xf32> to vector<2x16x1xf32>
    %57 = tpu.reciprocal %56 {approx = true} : vector<2x16x1xf32> -> vector<2x16x1xf32>
    %58 = vector.broadcast %57 : vector<2x16x1xf32> to vector<2x16x16xf32>
    %59 = arith.mulf %54, %58 : vector<2x16x16xf32>
    %60 = arith.truncf %59 : vector<2x16x16xf32> to vector<2x16x16xbf16>
    %61 = vector.extract_strided_slice %18 {offsets = [0, 0, 32], sizes = [2, 16, 32], strides = [1, 1, 1]} : vector<2x16x128xbf16> to vector<2x16x32xbf16>
    "tpu.trace_start"() <{level = 10 : i32, message = "bqk,bkd->bqd"}> : () -> ()
    %cst_17 = arith.constant dense<0.000000e+00> : vector<2x16x32xf32>
    %62 = tpu.matmul %60, %61, %cst_17 {dimension_numbers = #tpu.dot_dimension_numbers<[2], [1], [1], [2], [0, 0, 0, 1, 1, 2], [0], [0]>} : vector<2x16x16xbf16>, vector<2x16x32xbf16>, vector<2x16x32xf32> -> vector<2x16x32xf32>
    "tpu.trace_stop"() : () -> ()
    %63 = vector.extract_strided_slice %14 {offsets = [0, 0, 64], sizes = [2, 16, 32], strides = [1, 1, 1]} : vector<2x16x128xbf16> to vector<2x16x32xbf16>
    %64 = vector.extract_strided_slice %16 {offsets = [0, 0, 64], sizes = [2, 16, 32], strides = [1, 1, 1]} : vector<2x16x128xbf16> to vector<2x16x32xbf16>
    "tpu.trace_start"() <{level = 10 : i32, message = "bqd,bkd->bqk"}> : () -> ()
    %cst_18 = arith.constant dense<0.000000e+00> : vector<2x16x16xf32>
    %65 = tpu.matmul %63, %64, %cst_18 {dimension_numbers = #tpu.dot_dimension_numbers<[2], [2], [1], [1], [0, 0, 0, 1, 1, 1], [0], [0]>} : vector<2x16x32xbf16>, vector<2x16x32xbf16>, vector<2x16x16xf32> -> vector<2x16x16xf32>
    "tpu.trace_stop"() : () -> ()
    %66 = vector.shape_cast %24 : vector<16x16xf32> to vector<1x16x16xf32>
    %67 = vector.broadcast %66 : vector<1x16x16xf32> to vector<2x16x16xf32>
    %68 = arith.addf %65, %67 : vector<2x16x16xf32>
    %cst_19 = arith.constant dense<0xFF800000> : vector<2x16xf32>
    %69 = vector.multi_reduction <maximumf>, %68, %cst_19 [2] : vector<2x16x16xf32> to vector<2x16xf32>
    %70 = vector.shape_cast %69 : vector<2x16xf32> to vector<2x16x1xf32>
    %71 = vector.broadcast %70 : vector<2x16x1xf32> to vector<2x16x16xf32>
    %72 = arith.subf %68, %71 : vector<2x16x16xf32>
    %73 = math.exp %72 : vector<2x16x16xf32>
    %cst_20 = arith.constant dense<0.000000e+00> : vector<2x16xf32>
    %74 = vector.multi_reduction <add>, %73, %cst_20 [2] : vector<2x16x16xf32> to vector<2x16xf32>
    %75 = vector.shape_cast %74 : vector<2x16xf32> to vector<2x16x1xf32>
    %76 = tpu.reciprocal %75 {approx = true} : vector<2x16x1xf32> -> vector<2x16x1xf32>
    %77 = vector.broadcast %76 : vector<2x16x1xf32> to vector<2x16x16xf32>
    %78 = arith.mulf %73, %77 : vector<2x16x16xf32>
    %79 = arith.truncf %78 : vector<2x16x16xf32> to vector<2x16x16xbf16>
    %80 = vector.extract_strided_slice %18 {offsets = [0, 0, 64], sizes = [2, 16, 32], strides = [1, 1, 1]} : vector<2x16x128xbf16> to vector<2x16x32xbf16>
    "tpu.trace_start"() <{level = 10 : i32, message = "bqk,bkd->bqd"}> : () -> ()
    %cst_21 = arith.constant dense<0.000000e+00> : vector<2x16x32xf32>
    %81 = tpu.matmul %79, %80, %cst_21 {dimension_numbers = #tpu.dot_dimension_numbers<[2], [1], [1], [2], [0, 0, 0, 1, 1, 2], [0], [0]>} : vector<2x16x16xbf16>, vector<2x16x32xbf16>, vector<2x16x32xf32> -> vector<2x16x32xf32>
    "tpu.trace_stop"() : () -> ()
    %82 = vector.extract_strided_slice %14 {offsets = [0, 0, 96], sizes = [2, 16, 32], strides = [1, 1, 1]} : vector<2x16x128xbf16> to vector<2x16x32xbf16>
    %83 = vector.extract_strided_slice %16 {offsets = [0, 0, 96], sizes = [2, 16, 32], strides = [1, 1, 1]} : vector<2x16x128xbf16> to vector<2x16x32xbf16>
    "tpu.trace_start"() <{level = 10 : i32, message = "bqd,bkd->bqk"}> : () -> ()
    %cst_22 = arith.constant dense<0.000000e+00> : vector<2x16x16xf32>
    %84 = tpu.matmul %82, %83, %cst_22 {dimension_numbers = #tpu.dot_dimension_numbers<[2], [2], [1], [1], [0, 0, 0, 1, 1, 1], [0], [0]>} : vector<2x16x32xbf16>, vector<2x16x32xbf16>, vector<2x16x16xf32> -> vector<2x16x16xf32>
    "tpu.trace_stop"() : () -> ()
    %85 = vector.shape_cast %24 : vector<16x16xf32> to vector<1x16x16xf32>
    %86 = vector.broadcast %85 : vector<1x16x16xf32> to vector<2x16x16xf32>
    %87 = arith.addf %84, %86 : vector<2x16x16xf32>
    %cst_23 = arith.constant dense<0xFF800000> : vector<2x16xf32>
    %88 = vector.multi_reduction <maximumf>, %87, %cst_23 [2] : vector<2x16x16xf32> to vector<2x16xf32>
    %89 = vector.shape_cast %88 : vector<2x16xf32> to vector<2x16x1xf32>
    %90 = vector.broadcast %89 : vector<2x16x1xf32> to vector<2x16x16xf32>
    %91 = arith.subf %87, %90 : vector<2x16x16xf32>
    %92 = math.exp %91 : vector<2x16x16xf32>
    %cst_24 = arith.constant dense<0.000000e+00> : vector<2x16xf32>
    %93 = vector.multi_reduction <add>, %92, %cst_24 [2] : vector<2x16x16xf32> to vector<2x16xf32>
    %94 = vector.shape_cast %93 : vector<2x16xf32> to vector<2x16x1xf32>
    %95 = tpu.reciprocal %94 {approx = true} : vector<2x16x1xf32> -> vector<2x16x1xf32>
    %96 = vector.broadcast %95 : vector<2x16x1xf32> to vector<2x16x16xf32>
    %97 = arith.mulf %92, %96 : vector<2x16x16xf32>
    %98 = arith.truncf %97 : vector<2x16x16xf32> to vector<2x16x16xbf16>
    %99 = vector.extract_strided_slice %18 {offsets = [0, 0, 96], sizes = [2, 16, 32], strides = [1, 1, 1]} : vector<2x16x128xbf16> to vector<2x16x32xbf16>
    "tpu.trace_start"() <{level = 10 : i32, message = "bqk,bkd->bqd"}> : () -> ()
    %cst_25 = arith.constant dense<0.000000e+00> : vector<2x16x32xf32>
    %100 = tpu.matmul %98, %99, %cst_25 {dimension_numbers = #tpu.dot_dimension_numbers<[2], [1], [1], [2], [0, 0, 0, 1, 1, 2], [0], [0]>} : vector<2x16x16xbf16>, vector<2x16x32xbf16>, vector<2x16x32xf32> -> vector<2x16x32xf32>
    "tpu.trace_stop"() : () -> ()
    %101 = tpu.concatenate %43, %62, %81, %100 in 2 : vector<2x16x32xf32>, vector<2x16x32xf32>, vector<2x16x32xf32>, vector<2x16x32xf32> -> vector<2x16x128xf32>
    %102 = vector.shape_cast %101 : vector<2x16x128xf32> to vector<32x128xf32>
    %103 = arith.truncf %102 : vector<32x128xf32> to vector<32x128xbf16>
    %c0_26 = arith.constant 0 : index
    %c0_27 = arith.constant 0 : index
    %c0_28 = arith.constant 0 : index
    %104 = vector.load %arg5[%c0_26, %c0_27, %c0_28] : memref<1x128x128xbf16, #tpu.memory_space<vmem>>, vector<1x128x128xbf16>
    %105 = vector.shape_cast %104 : vector<1x128x128xbf16> to vector<128x128xbf16>
    %cst_29 = arith.constant dense<0.000000e+00> : vector<32x128xf32>
    %106 = tpu.matmul %103, %105, %cst_29 {dimension_numbers = #tpu.dot_dimension_numbers<[1], [0], [0], [1], [0, 0, 1, 1], [], []>} : vector<32x128xbf16>, vector<128x128xbf16>, vector<32x128xf32> -> vector<32x128xf32>
    %c0_30 = arith.constant 0 : index
    %c0_31 = arith.constant 0 : index
    %c0_32 = arith.constant 0 : index
    %107 = vector.load %arg6[%c0_30, %c0_31, %c0_32] : memref<1x1x128xf32, #tpu.memory_space<vmem>>, vector<1x1x128xf32>
    %108 = vector.shape_cast %107 : vector<1x1x128xf32> to vector<1x128xf32>
    %109 = vector.broadcast %108 : vector<1x128xf32> to vector<32x128xf32>
    %110 = arith.addf %106, %109 : vector<32x128xf32>
    %111 = arith.addf %3, %110 : vector<32x128xf32>
    %c0_33 = arith.constant 0 : index
    %c0_34 = arith.constant 0 : index
    %c0_35 = arith.constant 0 : index
    %112 = vector.load %arg7[%c0_33, %c0_34, %c0_35] : memref<1x1x128xf32, #tpu.memory_space<vmem>>, vector<1x1x128xf32>
    %113 = vector.shape_cast %112 : vector<1x1x128xf32> to vector<1x128xf32>
    %c0_36 = arith.constant 0 : index
    %c0_37 = arith.constant 0 : index
    %c0_38 = arith.constant 0 : index
    %114 = vector.load %arg8[%c0_36, %c0_37, %c0_38] : memref<1x1x128xf32, #tpu.memory_space<vmem>>, vector<1x1x128xf32>
    %115 = vector.shape_cast %114 : vector<1x1x128xf32> to vector<1x128xf32>
    %cst_39 = arith.constant dense<0.000000e+00> : vector<32xf32>
    %116 = vector.multi_reduction <add>, %111, %cst_39 [1] : vector<32x128xf32> to vector<32xf32>
    %117 = vector.shape_cast %116 : vector<32xf32> to vector<32x1xf32>
    %cst_40 = arith.constant 1.280000e+02 : f32
    %118 = vector.broadcast %cst_40 : f32 to vector<32x1xf32>
    %119 = arith.divf %117, %118 : vector<32x1xf32>
    %120 = vector.broadcast %119 : vector<32x1xf32> to vector<32x128xf32>
    %121 = arith.subf %111, %120 : vector<32x128xf32>
    %122 = arith.mulf %121, %121 : vector<32x128xf32>
    %cst_41 = arith.constant dense<0.000000e+00> : vector<32xf32>
    %123 = vector.multi_reduction <add>, %122, %cst_41 [1] : vector<32x128xf32> to vector<32xf32>
    %124 = vector.shape_cast %123 : vector<32xf32> to vector<32x1xf32>
    %cst_42 = arith.constant 1.280000e+02 : f32
    %125 = vector.broadcast %cst_42 : f32 to vector<32x1xf32>
    %126 = arith.divf %124, %125 : vector<32x1xf32>
    %127 = vector.broadcast %119 : vector<32x1xf32> to vector<32x128xf32>
    %128 = arith.subf %111, %127 : vector<32x128xf32>
    %cst_43 = arith.constant 9.99999974E-6 : f32
    %129 = vector.broadcast %cst_43 : f32 to vector<32x1xf32>
    %130 = arith.addf %126, %129 : vector<32x1xf32>
    %131 = math.rsqrt %130 : vector<32x1xf32>
    %132 = vector.broadcast %131 : vector<32x1xf32> to vector<32x128xf32>
    %133 = arith.mulf %128, %132 : vector<32x128xf32>
    %134 = vector.broadcast %113 : vector<1x128xf32> to vector<32x128xf32>
    %135 = arith.mulf %133, %134 : vector<32x128xf32>
    %136 = vector.broadcast %115 : vector<1x128xf32> to vector<32x128xf32>
    %137 = arith.addf %135, %136 : vector<32x128xf32>
    %138 = arith.truncf %137 : vector<32x128xf32> to vector<32x128xbf16>
    %c0_44 = arith.constant 0 : index
    %c0_45 = arith.constant 0 : index
    %c0_46 = arith.constant 0 : index
    %139 = vector.load %arg9[%c0_44, %c0_45, %c0_46] : memref<1x128x256xbf16, #tpu.memory_space<vmem>>, vector<1x128x256xbf16>
    %140 = vector.shape_cast %139 : vector<1x128x256xbf16> to vector<128x256xbf16>
    %cst_47 = arith.constant dense<0.000000e+00> : vector<32x256xf32>
    %141 = tpu.matmul %138, %140, %cst_47 {dimension_numbers = #tpu.dot_dimension_numbers<[1], [0], [0], [1], [0, 0, 1, 1], [], []>} : vector<32x128xbf16>, vector<128x256xbf16>, vector<32x256xf32> -> vector<32x256xf32>
    %c0_48 = arith.constant 0 : index
    %c0_49 = arith.constant 0 : index
    %c0_50 = arith.constant 0 : index
    %142 = vector.load %arg10[%c0_48, %c0_49, %c0_50] : memref<1x1x256xf32, #tpu.memory_space<vmem>>, vector<1x1x256xf32>
    %143 = vector.shape_cast %142 : vector<1x1x256xf32> to vector<1x256xf32>
    %144 = vector.broadcast %143 : vector<1x256xf32> to vector<32x256xf32>
    %145 = arith.addf %141, %144 : vector<32x256xf32>
    %cst_51 = arith.constant 0.000000e+00 : f32
    %146 = vector.broadcast %cst_51 : f32 to vector<32x256xf32>
    %147 = arith.maximumf %145, %146 : vector<32x256xf32>
    %148 = arith.truncf %147 : vector<32x256xf32> to vector<32x256xbf16>
    %c0_52 = arith.constant 0 : index
    %c0_53 = arith.constant 0 : index
    %c0_54 = arith.constant 0 : index
    %149 = vector.load %arg11[%c0_52, %c0_53, %c0_54] : memref<1x256x128xbf16, #tpu.memory_space<vmem>>, vector<1x256x128xbf16>
    %150 = vector.shape_cast %149 : vector<1x256x128xbf16> to vector<256x128xbf16>
    %cst_55 = arith.constant dense<0.000000e+00> : vector<32x128xf32>
    %151 = tpu.matmul %148, %150, %cst_55 {dimension_numbers = #tpu.dot_dimension_numbers<[1], [0], [0], [1], [0, 0, 1, 1], [], []>} : vector<32x256xbf16>, vector<256x128xbf16>, vector<32x128xf32> -> vector<32x128xf32>
    %c0_56 = arith.constant 0 : index
    %c0_57 = arith.constant 0 : index
    %c0_58 = arith.constant 0 : index
    %152 = vector.load %arg12[%c0_56, %c0_57, %c0_58] : memref<1x1x128xf32, #tpu.memory_space<vmem>>, vector<1x1x128xf32>
    %153 = vector.shape_cast %152 : vector<1x1x128xf32> to vector<1x128xf32>
    %154 = vector.broadcast %153 : vector<1x128xf32> to vector<32x128xf32>
    %155 = arith.addf %151, %154 : vector<32x128xf32>
    %156 = arith.addf %137, %155 : vector<32x128xf32>
    %c0_59 = arith.constant 0 : index
    %c0_60 = arith.constant 0 : index
    %c0_61 = arith.constant 0 : index
    %157 = vector.load %arg13[%c0_59, %c0_60, %c0_61] : memref<1x1x128xf32, #tpu.memory_space<vmem>>, vector<1x1x128xf32>
    %158 = vector.shape_cast %157 : vector<1x1x128xf32> to vector<1x128xf32>
    %c0_62 = arith.constant 0 : index
    %c0_63 = arith.constant 0 : index
    %c0_64 = arith.constant 0 : index
    %159 = vector.load %arg14[%c0_62, %c0_63, %c0_64] : memref<1x1x128xf32, #tpu.memory_space<vmem>>, vector<1x1x128xf32>
    %160 = vector.shape_cast %159 : vector<1x1x128xf32> to vector<1x128xf32>
    %cst_65 = arith.constant dense<0.000000e+00> : vector<32xf32>
    %161 = vector.multi_reduction <add>, %156, %cst_65 [1] : vector<32x128xf32> to vector<32xf32>
    %162 = vector.shape_cast %161 : vector<32xf32> to vector<32x1xf32>
    %cst_66 = arith.constant 1.280000e+02 : f32
    %163 = vector.broadcast %cst_66 : f32 to vector<32x1xf32>
    %164 = arith.divf %162, %163 : vector<32x1xf32>
    %165 = vector.broadcast %164 : vector<32x1xf32> to vector<32x128xf32>
    %166 = arith.subf %156, %165 : vector<32x128xf32>
    %167 = arith.mulf %166, %166 : vector<32x128xf32>
    %cst_67 = arith.constant dense<0.000000e+00> : vector<32xf32>
    %168 = vector.multi_reduction <add>, %167, %cst_67 [1] : vector<32x128xf32> to vector<32xf32>
    %169 = vector.shape_cast %168 : vector<32xf32> to vector<32x1xf32>
    %cst_68 = arith.constant 1.280000e+02 : f32
    %170 = vector.broadcast %cst_68 : f32 to vector<32x1xf32>
    %171 = arith.divf %169, %170 : vector<32x1xf32>
    %172 = vector.broadcast %164 : vector<32x1xf32> to vector<32x128xf32>
    %173 = arith.subf %156, %172 : vector<32x128xf32>
    %cst_69 = arith.constant 9.99999974E-6 : f32
    %174 = vector.broadcast %cst_69 : f32 to vector<32x1xf32>
    %175 = arith.addf %171, %174 : vector<32x1xf32>
    %176 = math.rsqrt %175 : vector<32x1xf32>
    %177 = vector.broadcast %176 : vector<32x1xf32> to vector<32x128xf32>
    %178 = arith.mulf %173, %177 : vector<32x128xf32>
    %179 = vector.broadcast %158 : vector<1x128xf32> to vector<32x128xf32>
    %180 = arith.mulf %178, %179 : vector<32x128xf32>
    %181 = vector.broadcast %160 : vector<1x128xf32> to vector<32x128xf32>
    %182 = arith.addf %180, %181 : vector<32x128xf32>
    %c0_70 = arith.constant 0 : index
    %c0_71 = arith.constant 0 : index
    %183 = vector.load %arg18[%c0_70, %c0_71] : memref<32x128xf32, #tpu.memory_space<vmem>>, vector<32x128xf32>
    tpu.vector_store %arg18[%c0_70, %c0_71], %182 {strides = array<i32>} : memref<32x128xf32, #tpu.memory_space<vmem>>, vector<32x128xf32>,
    %c1_i32 = arith.constant 1 : i32
    %184 = arith.cmpi eq, %arg1, %c1_i32 : i32
    %185 = arith.extui %184 : i1 to i32
    %c0_i32_72 = arith.constant 0 : i32
    %186 = arith.cmpi ne, %185, %c0_i32_72 : i32
    scf.if %186 {
      %187 = arith.truncf %182 : vector<32x128xf32> to vector<32x128xbf16>
      %c0_73 = arith.constant 0 : index
      %c0_74 = arith.constant 0 : index
      %188 = vector.load %arg15[%c0_73, %c0_74] : memref<128x128xbf16, #tpu.memory_space<vmem>>, vector<128x128xbf16>
      %cst_75 = arith.constant dense<0.000000e+00> : vector<32x128xf32>
      %189 = tpu.matmul %187, %188, %cst_75 {dimension_numbers = #tpu.dot_dimension_numbers<[1], [0], [0], [1], [0, 0, 1, 1], [], []>} : vector<32x128xbf16>, vector<128x128xbf16>, vector<32x128xf32> -> vector<32x128xf32>
      %c0_76 = arith.constant 0 : index
      %c0_77 = arith.constant 0 : index
      %190 = vector.load %arg16[%c0_76, %c0_77] : memref<1x128xf32, #tpu.memory_space<vmem>>, vector<1x128xf32>
      %191 = vector.broadcast %190 : vector<1x128xf32> to vector<32x128xf32>
      %192 = arith.addf %189, %191 : vector<32x128xf32>
      %193 = vector.shape_cast %192 : vector<32x128xf32> to vector<2x16x128xf32>
      %c0_78 = arith.constant 0 : index
      %c0_79 = arith.constant 0 : index
      %c0_80 = arith.constant 0 : index
      %194 = vector.load %arg17[%c0_78, %c0_79, %c0_80] : memref<2x16x128xf32, #tpu.memory_space<vmem>>, vector<2x16x128xf32>
      tpu.vector_store %arg17[%c0_78, %c0_79, %c0_80], %193 {strides = array<i32>} : memref<2x16x128xf32, #tpu.memory_space<vmem>>, vector<2x16x128xf32>,
    } else {
    }
    return
  }
  func.func @transform_0(%arg0: i32, %arg1: i32) -> (i32, i32, i32) {
    %c0_i32 = arith.constant 0 : i32
    %c0_i32_0 = arith.constant 0 : i32
    %c0_i32_1 = arith.constant 0 : i32
    return %arg0, %c0_i32, %c0_i32_0 : i32, i32, i32
  }
  func.func @transform_1(%arg0: i32, %arg1: i32) -> (i32, i32, i32) {
    %c0_i32 = arith.constant 0 : i32
    %c0_i32_0 = arith.constant 0 : i32
    %c0_i32_1 = arith.constant 0 : i32
    return %arg1, %c0_i32, %c0_i32_0 : i32, i32, i32
  }
  func.func @transform_2(%arg0: i32, %arg1: i32) -> (i32, i32, i32) {
    %c0_i32 = arith.constant 0 : i32
    %c0_i32_0 = arith.constant 0 : i32
    %c0_i32_1 = arith.constant 0 : i32
    return %arg1, %c0_i32, %c0_i32_0 : i32, i32, i32
  }
  func.func @transform_3(%arg0: i32, %arg1: i32) -> (i32, i32, i32) {
    %c0_i32 = arith.constant 0 : i32
    %c0_i32_0 = arith.constant 0 : i32
    %c0_i32_1 = arith.constant 0 : i32
    return %arg1, %c0_i32, %c0_i32_0 : i32, i32, i32
  }
  func.func @transform_4(%arg0: i32, %arg1: i32) -> (i32, i32, i32) {
    %c0_i32 = arith.constant 0 : i32
    %c0_i32_0 = arith.constant 0 : i32
    %c0_i32_1 = arith.constant 0 : i32
    return %arg1, %c0_i32, %c0_i32_0 : i32, i32, i32
  }
  func.func @transform_5(%arg0: i32, %arg1: i32) -> (i32, i32, i32) {
    %c0_i32 = arith.constant 0 : i32
    %c0_i32_0 = arith.constant 0 : i32
    %c0_i32_1 = arith.constant 0 : i32
    return %arg1, %c0_i32, %c0_i32_0 : i32, i32, i32
  }
  func.func @transform_6(%arg0: i32, %arg1: i32) -> (i32, i32, i32) {
    %c0_i32 = arith.constant 0 : i32
    %c0_i32_0 = arith.constant 0 : i32
    %c0_i32_1 = arith.constant 0 : i32
    return %arg1, %c0_i32, %c0_i32_0 : i32, i32, i32
  }
  func.func @transform_7(%arg0: i32, %arg1: i32) -> (i32, i32, i32) {
    %c0_i32 = arith.constant 0 : i32
    %c0_i32_0 = arith.constant 0 : i32
    %c0_i32_1 = arith.constant 0 : i32
    return %arg1, %c0_i32, %c0_i32_0 : i32, i32, i32
  }
  func.func @transform_8(%arg0: i32, %arg1: i32) -> (i32, i32, i32) {
    %c0_i32 = arith.constant 0 : i32
    %c0_i32_0 = arith.constant 0 : i32
    %c0_i32_1 = arith.constant 0 : i32
    return %arg1, %c0_i32, %c0_i32_0 : i32, i32, i32
  }
  func.func @transform_9(%arg0: i32, %arg1: i32) -> (i32, i32, i32) {
    %c0_i32 = arith.constant 0 : i32
    %c0_i32_0 = arith.constant 0 : i32
    %c0_i32_1 = arith.constant 0 : i32
    return %arg1, %c0_i32, %c0_i32_0 : i32, i32, i32
  }
  func.func @transform_10(%arg0: i32, %arg1: i32) -> (i32, i32, i32) {
    %c0_i32 = arith.constant 0 : i32
    %c0_i32_0 = arith.constant 0 : i32
    %c0_i32_1 = arith.constant 0 : i32
    return %arg1, %c0_i32, %c0_i32_0 : i32, i32, i32
  }
  func.func @transform_11(%arg0: i32, %arg1: i32) -> (i32, i32, i32) {
    %c0_i32 = arith.constant 0 : i32
    %c0_i32_0 = arith.constant 0 : i32
    %c0_i32_1 = arith.constant 0 : i32
    return %arg1, %c0_i32, %c0_i32_0 : i32, i32, i32
  }
  func.func @transform_12(%arg0: i32, %arg1: i32) -> (i32, i32, i32) {
    %c0_i32 = arith.constant 0 : i32
    %c0_i32_0 = arith.constant 0 : i32
    %c0_i32_1 = arith.constant 0 : i32
    return %arg1, %c0_i32, %c0_i32_0 : i32, i32, i32
  }
  func.func @transform_13(%arg0: i32, %arg1: i32) -> (i32, i32) {
    %c0_i32 = arith.constant 0 : i32
    %c0_i32_0 = arith.constant 0 : i32
    %c0_i32_1 = arith.constant 0 : i32
    return %c0_i32, %c0_i32_0 : i32, i32
  }
  func.func @transform_14(%arg0: i32, %arg1: i32) -> (i32, i32) {
    %c0_i32 = arith.constant 0 : i32
    %c0_i32_0 = arith.constant 0 : i32
    %c0_i32_1 = arith.constant 0 : i32
    return %c0_i32, %c0_i32_0 : i32, i32
  }
  func.func @transform_15(%arg0: i32, %arg1: i32) -> (i32, i32, i32) {
    %c0_i32 = arith.constant 0 : i32
    %c0_i32_0 = arith.constant 0 : i32
    %c0_i32_1 = arith.constant 0 : i32
    return %arg0, %c0_i32, %c0_i32_0 : i32, i32, i32
  }
}

</mosaic_0001>

<bundles_post_ra>
// kernel: transformer_forward.1
= control target key start
LH: loop header
LB: loop body
LE: loop exit
PB: predicated region body
PF: predicated region fallthrough
CT: control target
= control target key end

     0   :  { %s4874_s0 = inlined_call_operand.vmem [shape: f32[4,16,128], index: 0, kind: input, shape index: {}]   ;;  %s4875_s1 = inlined_call_operand.vmem [shape: bf16[2,128,384], index: 1, kind: input, shape index: {}]   ;;  %s4876_s2 = inlined_call_operand.vmem [shape: f32[2,1,384], index: 2, kind: input, shape index: {}]   ;;  %s4877_s3 = inlined_call_operand.hbm [shape: bf16[2,128,128], index: 3, kind: input, shape index: {}]   ;;  %s4878_s4 = inlined_call_operand.vmem [shape: f32[2,1,128], index: 4, kind: input, shape index: {}]   ;;  %s4879_s5 = inlined_call_operand.vmem [shape: f32[2,1,128], index: 5, kind: input, shape index: {}]   ;;  %s4880_s6 = inlined_call_operand.vmem [shape: f32[2,1,128], index: 6, kind: input, shape index: {}]   ;;  %s4881_s7 = inlined_call_operand.vmem [shape: bf16[2,128,256], index: 7, kind: input, shape index: {}]   ;;  %s4882_s8 = inlined_call_operand.hbm [shape: f32[2,1,256], index: 8, kind: input, shape index: {}]   ;;  %s4883_s9 = inlined_call_operand.vmem [shape: bf16[2,256,128], index: 9, kind: input, shape index: {}]   ;;  %s4884_s10 = inlined_call_operand.hbm [shape: f32[2,1,128], index: 10, kind: input, shape index: {}]   ;;  %s4885_s11 = inlined_call_operand.vmem [shape: f32[2,1,128], index: 11, kind: input, shape index: {}]   ;;  %s4886_s12 = inlined_call_operand.vmem [shape: f32[2,1,128], index: 12, kind: input, shape index: {}]   ;;  %s4887_s13 = inlined_call_operand.hbm [shape: bf16[128,128], index: 13, kind: input, shape index: {}]   ;;  %s4888_s14 = inlined_call_operand.hbm [shape: f32[1,128], index: 14, kind: input, shape index: {}]   ;;  %s4889_s15 = inlined_call_operand.vmem [shape: f32[4,16,128], index: 15, kind: output, shape index: {}]  }
   0x1   :  { %4910 = sst [smem:[#allocation22_spill]] %s4874_s0 }
   0x2   :  { %4911 = sst [smem:[#allocation23_spill]] %s4875_s1 }
   0x3   :  { %4912 = sst [smem:[#allocation24_spill]] %s4876_s2 }
   0x4   :  { %4913 = sst [smem:[#allocation25_spill]] %s4877_s3 }
   0x5   :  { %4914 = sst [smem:[#allocation26_spill]] %s4879_s5 }
   0x6   :  { %4915 = sst [smem:[#allocation27_spill]] %s4880_s6 }
   0x7   :  { %4916 = sst [smem:[#allocation28_spill]] %s4881_s7 }
   0x8   :  { %4917 = sst [smem:[#allocation29_spill]] %s4882_s8 }
   0x9   :  { %4918 = sst [smem:[#allocation30_spill]] %s4883_s9 }
   0xa   :  { %4919 = sst [smem:[#allocation31_spill]] %s4884_s10 }
   0xb   :  { %4920 = sst [smem:[#allocation32_spill]] %s4885_s11 }
   0xc   :  { %4921 = sst [smem:[#allocation33_spill]] %s4886_s12 }
   0xd   :  { %4922 = sst [smem:[#allocation34_spill]] %s4887_s13 }
   0xe   :  { %4923 = sst [smem:[#allocation35_spill]] %s4888_s14 }
   0xf   :  { %4924 = sst [smem:[#allocation36_spill]] %s4889_s15 }
  0x10   :  { %20 = vsyncpa [#allocation4], 0 }
  0x11   :  { %22 = vsyncpa [#allocation4 + $0x1], 0 }
  0x12   :  { %23 = vsyncpa [#allocation6], 0 }
  0x13   :  { %25 = vsyncpa [#allocation6 + $0x1], 0 }
  0x14   :  { %26 = vsyncpa [#allocation9], 0  ;;  %s4145_s18 = smov 0   ;;  %s4147_s19 = smov 0  }
  0x15   :  { %s4149_s20 = smov 0   ;;  %s4151_s21 = smov 0  }
  0x16   :  { %s4153_s22 = smov 0   ;;  %s4155_s23 = smov 0  }
  0x17   :  { %s4157_s24 = smov 0   ;;  %s4159_s25 = smov 0  }
  0x18 LB: > { %4925 = sst [smem:[#allocation14_spill]] %s4026_s19  ;;  %s4890_s26 = sadd.s32 4294967295, %s4050_s25   ;;  %s4050_s25 = sphi %s4159_s25, %s32_s25   ;;  %s4046_s24 = sphi %s4157_s24, %s4981_s24   ;;  %s4042_s23 = sphi %s4155_s23, %s4980_s23   ;;  %s4038_s22 = sphi %s4153_s22, %s4979_s22   ;;  %s4034_s21 = sphi %s4151_s21, %s4978_s21   ;;  %s4030_s20 = sphi %s4149_s20, %s4977_s20   ;;  %s4026_s19 = sphi %s4147_s19, %s4976_s19   ;;  %s4022_s18 = sphi %s4145_s18, %s4975_s18  }
  0x19   : > { %4926 = sst [smem:[#allocation15_spill]] %s4030_s20  ;;  %p142_p0 = scmp.ne.s32.totalorder %s4026_s19, %s4022_s18 }
  0x1a   : > { %4927 = sst [smem:[#allocation16_spill]] %s4042_s23  ;;  %p4187_p1 = scmp.eq.s32.totalorder %s4890_s26, 0 }
  0x1b   : > { %4928 = sst [smem:[#allocation17_spill]] %s4046_s24  ;;  %p3138_p2 = scmp.ge.s32.totalorder %s4050_s25, 1 }
  0x1c   : > { %4929 = sst [smem:[#allocation18_spill]] %s4050_s25  ;;  %p455_p3 = scmp.lt.s32.totalorder %s4050_s25, 5 }
  0x1d   : > { %s4930_s27 = scalar_select %p4187_p1, 1, 0 }
  0x1e   : > { %p4195_p4 = por %p4187_p1, %p142_p0  ;;  %p4199_p5 = pnand %p3138_p2, %p455_p3 }
  0x1f   : > { %s4052_s30 = smov [#allocation8]   ;;  %s4934_s13 = sld [smem:[#allocation34_spill]] }
  0x20   : > { %s4931_s28 = scalar_select %p4195_p4, 1, 0 }
  0x21   : > { %s4932_s29 = scalar_select %p4199_p5, 1, 0 }
  0x22   : > { %s467_s16 = sshll.u32 %s4052_s30, 4  ;;  %p3532_p6 = pneg %p4199_p5  ;;  %s468_s16 = int_to_ptr.vmem [resolvable:$true] %s467_s16 }
  0x24   : > { %p4207_p7 = pnand %p3532_p6, %p4187_p1 }
  0x25   : > { %s3830_s15 = scalar_lea.hbm %s4934_s13, 1024 }
  0x26   : > { %s4933_s17 = scalar_select %p4207_p7, 1, 0 }
  0x27   : > { %p3831_p8 = scmp.ne.s32.totalorder %s4934_s13, %s3830_s15  ;;  %p4900_p9 = pneg %p4207_p7 }
  0x28   : > { %p3837_p12 = scmp.lt.u32.totalorder %s3830_s15, %s4934_s13 }
  0x29   : > { %p3833_p10 = pnand %p4900_p9, %p3831_p8 }
  0x2b   : > { %p3834_p11 = pneg %p3833_p10 }
  0x2d   : > { %p3839_p13 = pnand %p3837_p12, %p3834_p11 }
  0x2f   : > { %3842 = shalt.err (!%p3839_p13)
}
  0x30   : > { %s3843_s26 = scalar_lea.vmem %s468_s16, 1024  ;;  %p3851_p6 = scmp.lt.s32.totalorder %s468_s16, %s468_s16 }
  0x31   : > { %p3844_p0 = scmp.ne.s32.totalorder %s468_s16, %s3843_s26  ;;  %p3852_p1 = scmp.lt.s32.totalorder %s3843_s26, %s3843_s26 }
  0x33   : > { %p3846_p2 = pnand %p3844_p0, %p4900_p9  ;;  %p3853_p4 = por %p3852_p1, %p3851_p6 }
  0x35   : > { %p3847_p3 = pneg %p3846_p2 }
  0x37   : > { %p3854_p5 = pnand %p3853_p4, %p3847_p3 }
  0x39   : > { %3857 = shalt.err (!%p3854_p5)
}
  0x3a   : > { %s4895_s11 = smov 64   ;;  %s4896_s9 = smov 4  }
  0x3b   : > { %3535 = dma.hbm_to_vmem [thread:$0]  (!%p4207_p7), %s4934_s13, 1024, %s468_s16, [#allocation9], %s4895_s11, %s4895_s11, %s4896_s9  }
  0x3c   : > { %s41_s18 = sadd.s32 1, %s4042_s23  ;;  %s44_s30 = sadd.s32 1, %s4046_s24 }
  0x3d   : > { %p42_p1 = scmp.ge.s32.totalorder %s41_s18, 2  ;;  %s129_s26 = sadd.s32 1, %s4030_s20 }
  0x3e   : > { %p136_p4 = scmp.ne.s32.totalorder %s4030_s20, %s4026_s19  ;;  %p137_p5 = scmp.eq.s32.totalorder %s4050_s25, 0 }
  0x3f   : > { %s4983_s18 = smov (%p42_p1, %s41_s18), 0  ;;  %s4985_s30 = smov (!%p42_p1, %s44_s30), %s4046_s24 }
  0x40   : > { %4935 = sst [smem:[#allocation19_spill]] %s4983_s18  ;;  %s126_s7 = ssub.s32 %s4042_s23, %s4983_s18 }
  0x41   : > { %p46_p8 = scmp.ge.s32.totalorder %s4985_s30, 2  ;;  %p127_p10 = scmp.eq.s32.totalorder %s126_s7, 0 }
  0x42   : > { %p138_p11 = por %p137_p5, %p136_p4  ;;  %p3551_p12 = scmp.lt.s32.totalorder %s4050_s25, 4 }
  0x43   : > { %s4987_s30 = smov (%p46_p8, %s4985_s30), 0  ;;  %s4254_s12 = sand.u32 1, %s4030_s20  }
  0x44   : > { %4936 = sst [smem:[#allocation20_spill]] %s4987_s30  ;;  %p4256_p13 = pnand %p3551_p12, %p138_p11 }
  0x45   : > { %s4251_s16 = scalar_select %p127_p10, %s4030_s20, %s129_s26  }
  0x46   : > { %s4938_s15 = scalar_select %p4256_p13, 1, 0 }
  0x47   : > { %4937 = sst [smem:[#allocation21_spill]] %s4251_s16  ;;  %s564_s11 = sand.u32 1, %s4050_s25  }
  0x48   : > { %s3145_s9 = sshll.u32 %s4254_s12, 1  ;;  %s3265_s13 = sshll.u32 %s4042_s23, 5 }
  0x49   : > { %s4939_s8 = sld [smem:[#allocation29_spill]]  ;;  %s568_s26 = scalar_lea.vmem [#allocation5], %s3145_s9 }
  0x4a   : > { %s576_s30 = sshll.u32 %s568_s26, 4  ;;  %s4270_s16 = scalar_lea.sflag [#allocation6], %s564_s11  ;;  %s4268_s30 = int_to_ptr.vmem [resolvable:$true] %s576_s30 }
  0x4b   : > { %p4276_p2 = pneg %p4256_p13 }
  0x4d   : > { %s4940_s6 = scalar_select %p4276_p2, 1, 0 }
  0x4f   : > { %s4266_s7 = scalar_lea.hbm %s4939_s8, %s3265_s13  ;;  %s3863_s9 = scalar_lea.hbm %s4939_s8, 64 }
  0x50   : > { %s3858_s20 = scalar_lea.hbm %s4266_s7, 32  ;;  %p3864_p1 = scmp.lt.u32.totalorder %s4266_s7, %s4939_s8 }
  0x51   : > { %p3859_p0 = scmp.ne.s32.totalorder %s4266_s7, %s3858_s20  ;;  %p3865_p4 = scmp.lt.u32.totalorder %s3863_s9, %s3858_s20 }
  0x52   : > { %p3867_p8 = scmp.lt.u32.totalorder %s3858_s20, %s4266_s7 }
  0x53   : > { %p3861_p3 = pnand %p4276_p2, %p3859_p0  ;;  %p3866_p5 = por %p3865_p4, %p3864_p1 }
  0x55   : > { %p3862_p6 = pneg %p3861_p3  ;;  %p3868_p10 = por %p3867_p8, %p3866_p5 }
  0x57   : > { %p3869_p11 = pnand %p3868_p10, %p3862_p6 }
  0x59   : > { %3872 = shalt.err (!%p3869_p11)
}
  0x5a   : > { %s3873_s11 = scalar_lea.vmem %s4268_s30, 32  ;;  %s4055_s13 = smov [#allocation5]  }
  0x5b   : > { %p3874_p12 = scmp.ne.s32.totalorder %s4268_s30, %s3873_s11  ;;  %s3878_s24 = sshll.u32 %s4055_s13, 4  ;;  %s3879_s24 = int_to_ptr.vmem [resolvable:$false] %s3878_s24 }
  0x5c   : > { %s3880_s18 = scalar_lea.vmem %s3879_s24, 64  ;;  %p3881_p9 = scmp.lt.s32.totalorder %s4268_s30, %s3879_s24 }
  0x5d   : > { %p3876_p0 = pnand %p3874_p12, %p4276_p2  ;;  %p3882_p7 = scmp.lt.s32.totalorder %s3880_s18, %s3873_s11 }
  0x5f   : > { %p3877_p3 = pneg %p3876_p0  ;;  %p3883_p1 = por %p3882_p7, %p3881_p9 }
  0x61   : > { %p3884_p4 = pnand %p3883_p1, %p3877_p3 }
  0x63   : > { %3887 = shalt.err (!%p3884_p4)
}
  0x64   : > { %3545 = dma.hbm_to_vmem [thread:$0]  (!%p4256_p13), %s4266_s7, 32, %s4268_s30, %s4270_s16  }
  0x65   : > { %s4056_s20 = smov [#allocation10]   ;;  %s3142_s26 = sshll.u32 %s4254_s12, 6 }
  0x66   : > { %s481_s9 = sshll.u32 %s4056_s20, 4  ;;  %s4941_s14 = sld [smem:[#allocation35_spill]]  ;;  %s482_s9 = int_to_ptr.vmem [resolvable:$true] %s481_s9 }
  0x67   : > { %p4942_p9 = scmp.ne.s32.totalorder %s4933_s17, 0 }
  0x69   : > { %p4943_p6 = pneg %p4942_p9 }
  0x6c   : > { %s3888_s24 = scalar_lea.hbm %s4941_s14, 16 }
  0x6d   : > { %p3889_p7 = scmp.ne.s32.totalorder %s4941_s14, %s3888_s24  ;;  %p3895_p10 = scmp.lt.u32.totalorder %s3888_s24, %s4941_s14 }
  0x6f   : > { %p3891_p5 = pnand %p3889_p7, %p4943_p6 }
  0x71   : > { %p3892_p8 = pneg %p3891_p5 }
  0x73   : > { %p3897_p11 = pnand %p3895_p10, %p3892_p8 }
  0x75   : > { %3900 = shalt.err (!%p3897_p11)
}
  0x76   : > { %s3901_s30 = scalar_lea.vmem %s482_s9, 16  ;;  %p4944_p0 = pmov %p4943_p6 }
  0x77   : > { %p3902_p12 = scmp.ne.s32.totalorder %s482_s9, %s3901_s30  ;;  %s3908_s8 = scalar_lea.vmem %s482_s9, 32 }
  0x78   : > { %p3909_p4 = scmp.lt.s32.totalorder %s482_s9, %s482_s9  ;;  %p3910_p13 = scmp.lt.s32.totalorder %s3908_s8, %s3901_s30 }
  0x79   : > { %p3904_p3 = pnand %p3902_p12, %p4944_p0 }
  0x7a   : > { %p3911_p2 = por %p3910_p13, %p3909_p4 }
  0x7b   : > { %p3905_p1 = pneg %p3904_p3 }
  0x7d   : > { %p3912_p6 = pnand %p3911_p2, %p3905_p1 }
  0x7f   : > { %3915 = shalt.err (!%p3912_p6)
}
  0x80   : > { %3538 = dma.hbm_to_vmem [thread:$0]  (!%p4942_p9), %s4941_s14, 16, %s482_s9, [#allocation9]  }
  0x81   : > { %s3264_s5 = sshll.u32 %s4042_s23, 10  ;;  %s4945_s3 = sld [smem:[#allocation25_spill]] }
  0x82   : > { %s521_s11 = scalar_lea.vmem [#allocation3], %s3142_s26  ;;  %s518_s17 = scalar_lea.sflag [#allocation4], %s4254_s12 }
  0x83   : > { %s528_s18 = sshll.u32 %s521_s11, 4  ;;  %p4946_p2 = scmp.ne.s32.totalorder %s4940_s6, 0  ;;  %s4327_s18 = int_to_ptr.vmem [resolvable:$true] %s528_s18 }
  0x87   : > { %s4325_s24 = scalar_lea.hbm %s4945_s3, %s3264_s5  ;;  %s3921_s7 = scalar_lea.hbm %s4945_s3, 2048 }
  0x88   : > { %s3916_s30 = scalar_lea.hbm %s4325_s24, 1024  ;;  %p3922_p5 = scmp.lt.u32.totalorder %s4325_s24, %s4945_s3 }
  0x89   : > { %p3917_p13 = scmp.ne.s32.totalorder %s4325_s24, %s3916_s30  ;;  %p3923_p8 = scmp.lt.u32.totalorder %s3921_s7, %s3916_s30 }
  0x8a   : > { %p3925_p11 = scmp.lt.u32.totalorder %s3916_s30, %s4325_s24 }
  0x8b   : > { %p3919_p7 = pnand %p3917_p13, %p4946_p2  ;;  %p3924_p10 = por %p3923_p8, %p3922_p5 }
  0x8d   : > { %p3920_p9 = pneg %p3919_p7  ;;  %p3926_p12 = por %p3925_p11, %p3924_p10 }
  0x8f   : > { %p3927_p0 = pnand %p3926_p12, %p3920_p9 }
  0x91   : > { %3930 = shalt.err (!%p3927_p0)
}
  0x92   : > { %s3931_s26 = scalar_lea.vmem %s4327_s18, 1024  ;;  %s4057_s20 = smov [#allocation3]  }
  0x93   : > { %p3932_p3 = scmp.ne.s32.totalorder %s4327_s18, %s3931_s26  ;;  %s3936_s13 = sshll.u32 %s4057_s20, 4  ;;  %s3937_s13 = int_to_ptr.vmem [resolvable:$false] %s3936_s13 }
  0x94   : > { %s3938_s11 = scalar_lea.vmem %s3937_s13, 2048  ;;  %p3939_p6 = scmp.lt.s32.totalorder %s4327_s18, %s3937_s13 }
  0x95   : > { %p3934_p1 = pnand %p3932_p3, %p4946_p2  ;;  %p3940_p13 = scmp.lt.s32.totalorder %s3938_s11, %s3931_s26 }
  0x97   : > { %p3935_p4 = pneg %p3934_p1  ;;  %p3941_p7 = por %p3940_p13, %p3939_p6 }
  0x99   : > { %p3942_p5 = pnand %p3941_p7, %p3935_p4 }
  0x9b   : > { %3945 = shalt.err (!%p3942_p5)
}
  0x9c   : > { %p4947_p9 = scmp.ne.s32.totalorder %s4938_s15, 0  ;;  %s4948_s30 = smov 4  }
  0x9d   : > { %s4949_s9 = smov 64   ;;  %s3148_s8 = sshll.u32 %s4042_s23, 4 }
  0x9e   : > { %3542 = dma.hbm_to_vmem [thread:$0]  (!%p4947_p9), %s4325_s24, 1024, %s4327_s18, %s518_s17, %s4949_s9, %s4949_s9, %s4948_s30  }
  0x9f   : > { %s594_s7 = scalar_lea.vmem [#allocation7], %s4254_s12  ;;  %s4950_s10 = sld [smem:[#allocation31_spill]] }
  0xa0   : > { %s601_s2 = sshll.u32 %s594_s7, 4  ;;  %s602_s2 = int_to_ptr.vmem [resolvable:$true] %s601_s2 }
  0xa5   : > { %s599_s20 = scalar_lea.hbm %s4950_s10, %s3148_s8  ;;  %s3951_s14 = scalar_lea.hbm %s4950_s10, 32 }
  0xa6   : > { %s3946_s13 = scalar_lea.hbm %s599_s20, 16  ;;  %p3952_p12 = scmp.lt.u32.totalorder %s599_s20, %s4950_s10 }
  0xa7   : > { %p3947_p8 = scmp.ne.s32.totalorder %s599_s20, %s3946_s13  ;;  %p3953_p0 = scmp.lt.u32.totalorder %s3951_s14, %s3946_s13 }
  0xa8   : > { %p3955_p1 = scmp.lt.u32.totalorder %s3946_s13, %s599_s20 }
  0xa9   : > { %p3949_p10 = pnand %p3947_p8, %p4946_p2  ;;  %p3954_p3 = por %p3953_p0, %p3952_p12 }
  0xab   : > { %p3950_p11 = pneg %p3949_p10  ;;  %p3956_p4 = por %p3955_p1, %p3954_p3 }
  0xad   : > { %p3957_p6 = pnand %p3956_p4, %p3950_p11 }
  0xaf   : > { %3960 = shalt.err (!%p3957_p6)
}
  0xb0   : > { %s3961_s12 = scalar_lea.vmem %s602_s2, 16  ;;  %s4058_s24 = smov [#allocation7]  }
  0xb1   : > { %p3962_p13 = scmp.ne.s32.totalorder %s602_s2, %s3961_s12  ;;  %s3966_s18 = sshll.u32 %s4058_s24, 4  ;;  %s3967_s18 = int_to_ptr.vmem [resolvable:$false] %s3966_s18 }
  0xb2   : > { %s3968_s3 = scalar_lea.vmem %s3967_s18, 32  ;;  %p3969_p8 = scmp.lt.s32.totalorder %s602_s2, %s3967_s18 }
  0xb3   : > { %p3964_p7 = pnand %p3962_p13, %p4946_p2  ;;  %p3970_p10 = scmp.lt.s32.totalorder %s3968_s3, %s3961_s12 }
  0xb5   : > { %p3965_p5 = pneg %p3964_p7  ;;  %p3971_p9 = por %p3970_p10, %p3969_p8 }
  0xb7   : > { %p3972_p0 = pnand %p3971_p9, %p3965_p5 }
  0xb9   : > { %3975 = shalt.err (!%p3972_p0)
}
  0xba   : > { %p4951_p12 = scmp.ne.s32.totalorder %s4938_s15, 0  ;;  %p4952_p11 = scmp.ne.s32.totalorder %s4932_s29, 0 }
  0xbb   : > { %s4377_s0 = sand.u32 (!%p4952_p11), 1, %s4026_s19   ;;  %p4953_p2 = scmp.ne.s32.totalorder (!%p4952_p11), %s4931_s28, 0 }
  0xbc   : > { %3548 = dma.hbm_to_vmem [thread:$0]  (!%p4951_p12), %s599_s20, 16, %s602_s2, %s4270_s16  }
  0xbd   : > { %622 = sbr.rel (%p4952_p11) target bundleno = 4594 (0x11f2), region = 80  ;;  %s3150_s1 = sshll.u32 (!%p4952_p11), %s4377_s0, 6 }
  0xbe   : > { %s625_s6 = scalar_lea.sflag (!%p4952_p11), [#allocation4], %s4377_s0  ;;  %s4381_s14 = scalar_lea.vmem (!%p4952_p11), [#allocation3], %s3150_s1 }
  0xc4   : > { %4009 = dma.done.wait (%p4953_p2), %s625_s6, 1024  }
  0xc5   : > { %4011 = vsyncadd (%p4953_p2), %s625_s6, 4294966272  ;;  %s4954_s16 = sadd.s32 4294967295, %s4050_s25   ;;  %s3151_s15 = sshll.u32 %s4377_s0, 1 }
  0xc6   : > { %s633_s29 = sand.u32 1, %s4954_s16   ;;  %s4390_s30 = scalar_lea.vmem [#allocation5], %s3151_s15 }
  0xc7   : > { %s634_s17 = scalar_lea.sflag [#allocation6], %s633_s29 }
  0xc8   : > { %4013 = dma.done.wait (%p4953_p2), %s634_s17, 48  }
  0xc9   : > { %4015 = vsyncadd (%p4953_p2), %s634_s17, 4294967248  ;;  %p4955_p9 = scmp.ne.s32.totalorder %s4930_s27, 0 }
  0xcb   : > { %4017 = dma.done.wait (%p4955_p9), [#allocation9], 1040  }
  0xcc   : > { %4019 = vsyncadd (%p4955_p9), [#allocation9], 4294966256  ;;  %s3154_s8 = sshll.u32 %s4038_s22, 1  ;;  %p757_p3 = scmp.lt.s32.totalorder %s4034_s21, 1 }
  0xcd   : > { %p751_p1 = scmp.lt.s32.totalorder %s3154_s8, 3  ;;  %s4956_s11 = sld [smem:[#allocation22_spill]] }
  0xce   : > { %s4404_s7 = scalar_select %p757_p3, %s4034_s21, 1 }
  0xcf   : > { %s4989_s8 = smov (!%p751_p1, %s3154_s8), 3  ;;  %s4957_s3 = sld [smem:[#allocation23_spill]] }
  0xd0   : > { %s3516_s28 = smul.u32 192, %s4404_s7  ;;  %s3266_s26 = sshll.u32 %s4989_s8, 4 }
  0xd1   : > { %s3517_s22 = smul.u32 3, %s4404_s7  ;;  %s4958_s29 = sld [smem:[#allocation24_spill]] }
  0xd2   : > { %s3267_s20 = sshll.u32 %s4404_s7, 7  ;;  %s4961_s19 = sld [smem:[#allocation28_spill]] }
  0xd3   : > { %s755_s12 = scalar_lea.vmem %s4956_s11, %s3266_s26  ;;  %s4964_s2 = sld [smem:[#allocation33_spill]] }
  0xd4   : > { %s4965_s23 = sld [smem:[#allocation36_spill]]  ;;  %p3165_p4 = scmp.ne.s32.totalorder %s4034_s21, 0 }
  0xd5   : > { %s4418_s1 = scalar_lea.vmem %s4957_s3, %s3516_s28  ;;  %s4962_s3 = sld [smem:[#allocation30_spill]]  ;;  %v803_v0 = vld [vmem:[%s755_s12] sm:$0xff] (!%p3165_p4)  ;;  %v804_v1 = vld [vmem:[%s755_s12 + $0x8] sm:$0xff] (!%p3165_p4)  ;;  %v805_v2 = vld [vmem:[%s755_s12 + $0x10] sm:$0xff] (!%p3165_p4) }
  0xd6   : > { %807 = vst [vmem:[#allocation2] sm:$0xff] (!%p3165_p4), %v803_v0  ;;  %808 = vst [vmem:[#allocation2 + $0x8] sm:$0xff] (!%p3165_p4), %v804_v1  ;;  %v806_v3 = vld [vmem:[%s755_s12 + $0x18] sm:$0xff] (!%p3165_p4) }
  0xd7   : > { %s4423_s15 = scalar_lea.vmem %s4958_s29, %s3517_s22  ;;  %s4963_s29 = sld [smem:[#allocation32_spill]]  ;;  %809 = vst [vmem:[#allocation2 + $0x10] sm:$0xff] (!%p3165_p4), %v805_v2  ;;  %810 = vst [vmem:[#allocation2 + $0x18] sm:$0xff] (!%p3165_p4), %v806_v3 }
  0xd8   : > { %s4437_s24 = scalar_lea.vmem %s4961_s19, %s3267_s20  ;;  %802 = sbr.rel (%p3165_p4) target bundleno = 223 (0xdf), region = 104 }
  0xd9   : > { %s790_s5 = scalar_lea.vmem %s4964_s2, %s4404_s7 }
  0xda   : > { %s4455_s25 = scalar_lea.vmem %s4965_s23, %s3266_s26 }
  0xdb   : > { %s4442_s6 = scalar_lea.vmem %s4962_s3, %s3267_s20 }
  0xdd   : > { %s787_s9 = scalar_lea.vmem %s4963_s29, %s4404_s7 }
  0xdf PF: > { %v3658_v4 = vld [vmem:[%s4418_s1 + $0x4] ss:$12 sps:$4 sm:$0xff]   ;;  %v3660_v5 = vld [vmem:[%s4418_s1] ss:$12 sps:$4 sm:$0xff]   ;;  %v4059_v6 = vmov 0   ;;  %v814_v25 = vld [vmem:[#allocation2 + $0x18] sm:$0xff]  ;;  %v851_v28 = vlaneseq }
  0xe0   : > { %1026 = vmatprep.mubr.bf16.mxu0 %v4059_v6  ;;  %994 = vmatprep.subr.bf16.mxu0 %v3658_v4  ;;  %v3661_v7 = vld [vmem:[%s4418_s1 + $0x1c] ss:$12 sps:$4 sm:$0xff]   ;;  %v3663_v8 = vld [vmem:[%s4418_s1 + $0x18] ss:$12 sps:$4 sm:$0xff]   ;;  %v3664_v9 = vld [vmem:[%s4418_s1 + $0x34] ss:$12 sps:$4 sm:$0xff]  }
  0xe1   : > { %995 = vmatpush1.bf16.msra.mxu0 %v3660_v5  ;;  %v3666_v10 = vld [vmem:[%s4418_s1 + $0x30] ss:$12 sps:$4 sm:$0xff]   ;;  %v3667_v11 = vld [vmem:[%s4418_s1 + $0x4c] ss:$12 sps:$4 sm:$0xff]   ;;  %v811_v12 = vld [vmem:[#allocation2] sm:$0xff]  ;;  %v4060_v27 = vmov 0.0  }
  0xe2   : > { %996 = vmatprep.subr.bf16.mxu0 %v3661_v7  ;;  %v3669_v13 = vld [vmem:[%s4418_s1 + $0x48] ss:$12 sps:$4 sm:$0xff]   ;;  %v3670_v15 = vld [vmem:[%s4418_s1 + $0x64] ss:$12 sps:$4 sm:$0xff]   ;;  %v3672_v17 = vld [vmem:[%s4418_s1 + $0x60] ss:$12 sps:$4 sm:$0xff]  }
  0xe3   : > { %v812_v14 = vld [vmem:[#allocation2 + $0x8] sm:$0xff]  ;;  %v3675_v19 = vld [vmem:[%s4418_s1 + $0x78] ss:$12 sps:$4 sm:$0xff]   ;;  %v3676_v20 = vld [vmem:[%s4418_s1 + $0x94] ss:$12 sps:$4 sm:$0xff]   ;;  %vm4061_vm0 = vmmov 0  }
  0xe4   : > { %v815_v16 = vpack.c.bf16 %v812_v14, %v811_v12  ;;  %v3673_v18 = vld [vmem:[%s4418_s1 + $0x7c] ss:$12 sps:$4 sm:$0xff]   ;;  %v3679_v22 = vld [vmem:[%s4418_s1 + $0xac] ss:$12 sps:$4 sm:$0xff]   ;;  %v813_v24 = vld [vmem:[#allocation2 + $0x10] sm:$0xff]  ;;  %v4483_v29 = vshrl.u32 %v851_v28, 7 }
  0xe5   : > { %997 = vmatpush1.bf16.msra.mxu0 %v3663_v8  ;;  %v3678_v21 = vld [vmem:[%s4418_s1 + $0x90] ss:$12 sps:$4 sm:$0xff]   ;;  %v3681_v23 = vld [vmem:[%s4418_s1 + $0xa8] ss:$12 sps:$4 sm:$0xff]   ;;  %v4476_v26 = vpack.c.bf16 %v814_v25, %v813_v24  ;;  %v4487_v31 = vld [vmem:[%s4423_s15] sm:$0x7] }
  0xe6   : > { %998 = vmatprep.subr.bf16.mxu0 %v3664_v9  ;;  %3376 = vmatprep.mubr.bf16.mxu1 %v815_v16  ;;  %v853_v30 = vsub.s32 0, %v4483_v29  ;;  %v857_v32 = vsub.s32 1, %v4483_v29  ;;  %vm1111_vm1 = vcmask 261120   ;;  %v3682_v57 = vld [vmem:[%s4418_s1 + $0x8] ss:$12 sps:$4 sm:$0xff]   ;;  %v1106_v1 = vand.u32 127, %v851_v28 }
  0xe7   : > { %v3683_v58 = vld [vmem:[%s4418_s1 + $0x20] ss:$12 sps:$4 sm:$0xff]   ;;  %3360 = vmatprep.subr.bf16.mxu1 %v3682_v57  ;;  %v3684_v59 = vld [vmem:[%s4418_s1 + $0x38] ss:$12 sps:$4 sm:$0xff]   ;;  %v3685_v60 = vld [vmem:[%s4418_s1 + $0x50] ss:$12 sps:$4 sm:$0xff]  }
  0xe8   : > { %v854_v33 = vrot.slane %v4487_v31, %v853_v30  ;;  %v858_v35 = vrot.slane %v4487_v31, %v857_v32  ;;  %3361 = vmatpush3.bf16.msra.mxu1 %v3682_v57  ;;  %v3686_v61 = vld [vmem:[%s4418_s1 + $0x68] ss:$12 sps:$4 sm:$0xff]   ;;  %v3687_v62 = vld [vmem:[%s4418_s1 + $0x80] ss:$12 sps:$4 sm:$0xff]   ;;  %v3688_v63 = vld [vmem:[%s4418_s1 + $0x98] ss:$12 sps:$4 sm:$0xff]   ;;  %vm1107_vm2 = vcmp.gt.s32.totalorder %v1106_v1, %v4483_v29 }
  0xe9   : > { %999 = vmatpush1.bf16.msra.mxu0 %v3666_v10  ;;  %3362 = vmatprep.subr.bf16.mxu1 %v3683_v58  ;;  %v3689_v0 = vld [vmem:[%s4418_s1 + $0xb0] ss:$12 sps:$4 sm:$0xff]   ;;  %v1104_v2 = vadd.s32 8, %v4483_v29  ;;  %v4534_v3 = vsel %vm1107_vm2, -1e+30, %v4060_v27  ;;  %vm1206_vm4 = vcmask 130048   ;;  %s4966_s1 = scalar_lea.vmem %s4878_s4, %s4404_s7 }
  0xea   : > { %1000 = vmatprep.subr.bf16.mxu0 %v3667_v11  ;;  %s4062_s19 = smov 96   ;;  %s4063_s23 = smov 64   ;;  %vm2125_vm5 = vcmask 523264   ;;  %vm2130_vm6 = vcmask 785408  }
  0xeb   : > { %vm1108_vm3 = vcmp.gt.s32.totalorder %v1106_v1, %v1104_v2  ;;  %s4064_s26 = smov 32   ;;  %s4967_s20 = sld [smem:[#allocation26_spill]] }
  0xec   : > { %3363 = vmatpush3.bf16.msra.mxu1 %v3683_v58  ;;  %v4537_v5 = vsel %vm1108_vm3, -1e+30, %v4060_v27  ;;  %s4969_s28 = sld [smem:[#allocation27_spill]]  ;;  %p3252_p6 = scmp.ne.s32.totalorder %s4034_s21, 1 }
  0xed   : > { %1001 = vmatpush1.bf16.msra.mxu0 %v3669_v13  ;;  %3364 = vmatprep.subr.bf16.mxu1 %v3684_v59 }
  0xee   : > { %1002 = vmatprep.subr.bf16.mxu0 %v3670_v15 }
  0xf0   : > { %3365 = vmatpush3.bf16.msra.mxu1 %v3684_v59 }
  0xf1   : > { %1003 = vmatpush1.bf16.msra.mxu0 %v3672_v17  ;;  %3366 = vmatprep.subr.bf16.mxu1 %v3685_v60  ;;  %s4968_s13 = scalar_lea.vmem %s4967_s20, %s4404_s7 }
  0xf2   : > { %1004 = vmatprep.subr.bf16.mxu0 %v3673_v18  ;;  %s4970_s18 = scalar_lea.vmem %s4969_s28, %s4404_s7 }
  0xf4   : > { %3367 = vmatpush3.bf16.msra.mxu1 %v3685_v60 }
  0xf5   : > { %1005 = vmatpush1.bf16.msra.mxu0 %v3675_v19  ;;  %3368 = vmatprep.subr.bf16.mxu1 %v3686_v61 }
  0xf6   : > { %1006 = vmatprep.subr.bf16.mxu0 %v3676_v20 }
  0xf8   : > { %3369 = vmatpush3.bf16.msra.mxu1 %v3686_v61 }
  0xf9   : > { %1007 = vmatpush1.bf16.msra.mxu0 %v3678_v21  ;;  %3370 = vmatprep.subr.bf16.mxu1 %v3687_v62 }
  0xfa   : > { %1008 = vmatprep.subr.bf16.mxu0 %v3679_v22 }
  0xfc   : > { %3371 = vmatpush3.bf16.msra.mxu1 %v3687_v62 }
  0xfd   : > { %1009 = vmatpush1.bf16.msra.mxu0 %v3681_v23  ;;  %3372 = vmatprep.subr.bf16.mxu1 %v3688_v63 }
  0xfe   : > { %3380 = vmatprep.subr.bf16.mxu0 %v4060_v27 }
 0x100   : > { %1027 = vmatmul.mubr.bf16.vlgmr.msra.gmra.mrb[0].mxu0 %v815_v16  ;;  %3373 = vmatpush3.bf16.msra.mxu1 %v3688_v63 }
 0x101   : > { %1036 = vmatprep.mubr.bf16.mxu0 %v4059_v6  ;;  %3374 = vmatprep.subr.bf16.mxu1 %v3689_v0 }
 0x104   : > { %3375 = vmatpush3.bf16.msra.mxu1 %v3689_v0 }
 0x105   : > { %3392 = vmatprep.subr.bf16.mxu1 %v4060_v27 }
 0x107   : > { %3377 = vmatmul.mubr.bf16.vlgmr.msra.gmra.mrb[0].mxu1 %v4476_v26 }
 0x108   : > { %1037 = vmatmul.mubr.bf16.gmra.mrb[4].mxu0 %v4476_v26  ;;  %3394 = vmatprep.mubr.msk.bf16.mxu1 %vm4061_vm0, %v4060_v27 }
 0x109   : > { %3382 = vmatprep.mubr.msk.bf16.mxu0 %vm4061_vm0, %v4060_v27 }
 0x1d3   : > { %v1028_v34 = vpop.f32.mrb[0].mxu0 }
 0x1d4   : > { %v1030_v36 = vpop.f32.mrb[1].mxu0  ;;  %v1029_v38 = vadd.f32 %v1028_v34, %v854_v33 }
 0x1d5   : > { %v1032_v37 = vpop.f32.mrb[2].mxu0  ;;  %v1031_v41 = vadd.f32 %v1030_v36, %v858_v35 }
 0x1d6   : > { %v1033_v39 = vadd.f32 %v1032_v37, %v854_v33  ;;  %v1034_v40 = vpop.f32.mrb[3].mxu0 }
 0x1d7   : > { %v1035_v42 = vadd.f32 %v1034_v40, %v858_v35 }
 0x1d8   : > { %v4496_v43 = vpack.c.bf16 %v1033_v39, %v1029_v38 }
 0x1d9   : > { %v4498_v44 = vpack.c.bf16 %v1035_v42, %v1031_v41  ;;  %v861_v42 = vsub.s32 2, %v4483_v29 }
 0x1db   : > { %v1038_v45 = vpop.f32.mrb[4].mxu0  ;;  %v1116_v46 = vsel %vm1111_vm1, %v4498_v44, 0 }
 0x1dc   : > { %v1039_v47 = vadd.f32 %v1038_v45, %v854_v33  ;;  %v1040_v48 = vpop.f32.mrb[5].mxu0  ;;  %3381 = vmatpush3.bf16.xpose.msra.mxu0 %v1116_v46  ;;  %v3378_v45 = vpop.f32.mrb[0].mxu1 }
 0x1dd   : > { %v1041_v49 = vadd.f32 %v1040_v48, %v858_v35  ;;  %v1042_v50 = vpop.f32.mrb[6].mxu0  ;;  %3386 = vmatprep.subr.bf16.mxu0 %v4060_v27  ;;  %v1081_v46 = vpop.f32.mrb[1].mxu1 }
 0x1de   : > { %v1043_v51 = vadd.f32 %v1042_v50, %v854_v33  ;;  %v1044_v52 = vpop.f32.mrb[7].mxu0  ;;  %v3379_v48 = vpop.f32.mrb[2].mxu1 }
 0x1df   : > { %v1045_v53 = vadd.f32 %v1044_v52, %v858_v35 }
 0x1e0   : > { %v4503_v54 = vpack.c.bf16 %v1043_v51, %v1039_v47  ;;  %v862_v47 = vrot.slane %v4487_v31, %v861_v42 }
 0x1e1   : > { %v4505_v55 = vpack.c.bf16 %v1045_v53, %v1041_v49  ;;  %v1084_v49 = vpop.f32.mrb[3].mxu1 }
 0x1e2   : > { %v1082_v50 = vadd.f32 %v1081_v46, %v862_v47  ;;  %v1085_v51 = vadd.f32 %v1084_v49, %v862_v47  ;;  %v1090_v53 = vadd.f32 %v3378_v45, %v862_v47 }
 0x1e3   : > { %3383 = vmatmul.mubr.msk.bf16.vlgmr.msra.gmra.mrb[8].mxu0 %vm1111_vm1, %v4496_v43  ;;  %v1163_v56 = vsel %vm1111_vm1, %v4505_v55, 0 }
 0x1e4   : > { %3387 = vmatpush3.bf16.xpose.msra.mxu0 %v1163_v56  ;;  %3388 = vmatprep.mubr.msk.bf16.mxu0 %vm4061_vm0, %v4060_v27  ;;  %v4554_v52 = vpack.c.bf16 %v1085_v51, %v1082_v50  ;;  %v1093_v56 = vadd.f32 %v3379_v48, %v862_v47 }
 0x1e5   : > { %3398 = vmatprep.subr.bf16.mxu0 %v4060_v27 }
 0x1e6   : > { %3393 = vmatpush3.bf16.msra.mxu1 %v4554_v52  ;;  %v4560_v31 = vpack.c.bf16 %v1093_v56, %v1090_v53 }
 0x1e7   : > { %3404 = vmatprep.subr.bf16.mxu1 %v4060_v27 }
 0x1eb   : > { %3389 = vmatmul.mubr.msk.bf16.vlgmr.msra.gmra.mrb[12].mxu0 %vm1111_vm1, %v4503_v54 }
 0x1ec   : > { %3400 = vmatprep.mubr.msk.bf16.mxu0 %vm4061_vm0, %v4060_v27  ;;  %3399 = vmatpush3.bf16.msra.mxu0 %v4560_v31 }
 0x1ed   : > { %3410 = vmatprep.subr.bf16.mxu0 %v4060_v27 }
 0x2b6   : > { %v1152_v4 = vpop.f32.mrb[8].mxu0 }
 0x2b7   : > { %v1153_v7 = vadd.f32 %v1152_v4, %v4534_v3  ;;  %v3384_v8 = vpop.f32.mrb[9].mxu0 }
 0x2b8   : > { %v1155_v9 = vpop.f32.mrb[10].mxu0 }
 0x2b9   : > { %v1156_v10 = vadd.f32 %v1155_v9, %v4537_v5  ;;  %v3385_v11 = vpop.f32.mrb[11].mxu0  ;;  %v1207_v12 = vsel %vm1206_vm4, %v1153_v7, -inf }
 0x2ba   : > { %1208 = vmax.xlane.f32.xlu0 %v1207_v12 }
 0x2bb   : > { %v1210_v13 = vsel %vm1206_vm4, %v1156_v10, -inf }
 0x2be   : > { %1211 = vmax.xlane.f32.xlu0 %v1210_v13  ;;  %v1199_v14 = vpop.f32.mrb[12].mxu0 }
 0x2bf   : > { %v1200_v15 = vadd.f32 %v1199_v14, %v4534_v3  ;;  %v3390_v16 = vpop.f32.mrb[13].mxu0 }
 0x2c0   : > { %v1202_v17 = vpop.f32.mrb[14].mxu0 }
 0x2c1   : > { %v1213_v18 = vsel %vm1206_vm4, %v1200_v15, -inf  ;;  %v1203_v19 = vadd.f32 %v1202_v17, %v4537_v5  ;;  %v3391_v20 = vpop.f32.mrb[15].mxu0 }
 0x2c2   : > { %1214 = vmax.xlane.f32.xlu1 %v1213_v18 }
 0x2c3   : > { %v1216_v21 = vsel %vm1206_vm4, %v1203_v19, -inf }
 0x2c6   : > { %1217 = vmax.xlane.f32.xlu1 %v1216_v21 }
 0x347   : > { %v1209_v22 = vpop.xlane.xlu0 %1208 }
 0x348   : > { %v1219_v23 = vsub.f32 %v1153_v7, %v1209_v22 }
 0x34a   : > { %v1223_v24 = vmul.f32 1.442695, %v1219_v23 }
 0x34b   : > { %v1212_v25 = vpop.xlane.xlu0 %1211 }
 0x34c   : > { %3738 = vpow2.f32 %v1223_v24  ;;  %v1220_v26 = vsub.f32 %v1156_v10, %v1212_v25 }
 0x34e   : > { %v1225_v28 = vmul.f32 1.442695, %v1220_v26 }
 0x34f   : > { %v1215_v33 = vpop.xlane.xlu1 %1214 }
 0x350   : > { %3740 = vpow2.f32 %v1225_v28  ;;  %v1221_v34 = vsub.f32 %v1200_v15, %v1215_v33 }
 0x352   : > { %v1227_v35 = vmul.f32 1.442695, %v1221_v34 }
 0x353   : > { %v1218_v57 = vpop.xlane.xlu1 %1217 }
 0x354   : > { %3742 = vpow2.f32 %v1227_v35  ;;  %v1222_v58 = vsub.f32 %v1203_v19, %v1218_v57 }
 0x356   : > { %v3739_v36 = vpop.eup %3738  ;;  %v1229_v59 = vmul.f32 1.442695, %v1222_v58 }
 0x357   : > { %v1231_v37 = vsel %vm1206_vm4, %v3739_v36, 0.0 }
 0x358   : > { %1232 = vadd.xlane.f32.xlu0 %v1231_v37  ;;  %3744 = vpow2.f32 %v1229_v59 }
 0x35a   : > { %v3741_v38 = vpop.eup %3740 }
 0x35b   : > { %v1234_v39 = vsel %vm1206_vm4, %v3741_v38, 0.0 }
 0x35c   : > { %1235 = vadd.xlane.f32.xlu1 %v1234_v39 }
 0x35e   : > { %v3743_v40 = vpop.eup %3742 }
 0x35f   : > { %v1237_v41 = vsel %vm1206_vm4, %v3743_v40, 0.0 }
 0x360   : > { %1238 = vadd.xlane.f32.xlu0 %v1237_v41 }
 0x362   : > { %v3745_v60 = vpop.eup %3744 }
 0x363   : > { %v1240_v61 = vsel %vm1206_vm4, %v3745_v60, 0.0 }
 0x36d   : > { %1398 = vrot.lane.b32.xlu1 %v4505_v55, %s4062_s19 }
 0x376   : > { %1345 = vrot.lane.b32.xlu0 %v4498_v44, %s4062_s19 }
 0x391   : > { %1241 = vadd.xlane.f32.xlu1 %v1240_v61 }
 0x3a2   : > { %1342 = vrot.lane.b32.xlu1 %v4496_v43, %s4062_s19 }
 0x3a6   : > { %1395 = vrot.lane.b32.xlu1 %v4503_v54, %s4062_s19 }
 0x3e5   : > { %v1233_v62 = vpop.xlane.xlu0 %1232 }
 0x3e6   : > { %3746 = vrcp.f32 %v1233_v62 }
 0x3e9   : > { %v1236_v63 = vpop.xlane.xlu1 %1235 }
 0x3ea   : > { %3748 = vrcp.f32 %v1236_v63 }
 0x3ed   : > { %v1239_v0 = vpop.xlane.xlu0 %1238  ;;  %v1399_v11 = vpop.permute.xlu1 %1398 }
 0x3ee   : > { %3750 = vrcp.f32 %v1239_v0  ;;  %v1404_v19 = vsel %vm1111_vm1, %v1399_v11, 0 }
 0x3f0   : > { %v3747_v1 = vpop.eup %3746 }
 0x3f1   : > { %v1247_v4 = vmul.f32 %v3747_v1, %v3739_v36  ;;  %v1346_v8 = vpop.permute.xlu0 %1345 }
 0x3f2   : > { %v1351_v10 = vsel %vm1111_vm1, %v1346_v8, 0 }
 0x3f4   : > { %v3749_v2 = vpop.eup %3748 }
 0x3f5   : > { %v1248_v7 = vmul.f32 %v3749_v2, %v3741_v38 }
 0x3f7   : > { %v1251_v9 = vpack.c.bf16 %v1248_v7, %v1247_v4 }
 0x3f8   : > { %v3751_v14 = vpop.eup %3750 }
 0x3f9   : > { %3395 = vmatmul.mubr.msk.bf16.vlgmr.msra.gmra.mrb[4].mxu1 %vm1206_vm4, %v1251_v9  ;;  %v1249_v16 = vmul.f32 %v3751_v14, %v3743_v40 }
 0x3fa   : > { %3405 = vmatpush3.bf16.xpose.msra.mxu1 %v1351_v10  ;;  %3406 = vmatprep.mubr.msk.bf16.mxu1 %vm4061_vm0, %v4060_v27 }
 0x3fb   : > { %3416 = vmatprep.subr.bf16.mxu1 %v4060_v27 }
 0x41e   : > { %v1242_v12 = vpop.xlane.xlu1 %1241 }
 0x41f   : > { %3752 = vrcp.f32 %v1242_v12 }
 0x422   : > { %v1343_v13 = vpop.permute.xlu1 %1342 }
 0x423   : > { %3407 = vmatmul.mubr.msk.bf16.vlgmr.msra.gmra.mrb[8].mxu1 %vm1111_vm1, %v1343_v13 }
 0x424   : > { %3418 = vmatprep.mubr.msk.bf16.mxu1 %vm4061_vm0, %v4060_v27 }
 0x426   : > { %v1396_v20 = vpop.permute.xlu1 %1395 }
 0x429   : > { %v3753_v15 = vpop.eup %3752 }
 0x42a   : > { %v1250_v17 = vmul.f32 %v3753_v15, %v3745_v60 }
 0x42c   : > { %v1252_v18 = vpack.c.bf16 %v1250_v17, %v1249_v16 }
 0x42e   : > { %3401 = vmatmul.mubr.msk.bf16.vlgmr.msra.gmra.mrb[16].mxu0 %vm1206_vm4, %v1252_v18 }
 0x42f   : > { %3411 = vmatpush3.bf16.xpose.msra.mxu0 %v1404_v19  ;;  %3412 = vmatprep.mubr.msk.bf16.mxu0 %vm4061_vm0, %v4060_v27 }
 0x430   : > { %3422 = vmatprep.subr.bf16.mxu0 %v4060_v27 }
 0x436   : > { %3413 = vmatmul.mubr.msk.bf16.vlgmr.msra.gmra.mrb[20].mxu0 %vm1111_vm1, %v1396_v20 }
 0x437   : > { %3424 = vmatprep.mubr.msk.bf16.mxu0 %vm4061_vm0, %v4060_v27 }
 0x4cc   : > { %v4585_v21 = vpop.f32.mrb[4].mxu1 }
 0x4cd   : > { %v3396_v22 = vpop.f32.mrb[5].mxu1 }
 0x4ce   : > { %v4587_v23 = vpop.f32.mrb[6].mxu1 }
 0x4cf   : > { %v3397_v24 = vpop.f32.mrb[7].mxu1 }
 0x4f6   : > { %v1387_v25 = vpop.f32.mrb[8].mxu1 }
 0x4f7   : > { %v1388_v26 = vadd.f32 %v1387_v25, %v4534_v3  ;;  %v3408_v28 = vpop.f32.mrb[9].mxu1 }
 0x4f8   : > { %v1390_v33 = vpop.f32.mrb[10].mxu1 }
 0x4f9   : > { %v1391_v34 = vadd.f32 %v1390_v33, %v4537_v5  ;;  %v3409_v35 = vpop.f32.mrb[11].mxu1  ;;  %v1447_v36 = vsel %vm1206_vm4, %v1388_v26, -inf }
 0x4fa   : > { %1448 = vmax.xlane.f32.xlu0 %v1447_v36 }
 0x4fb   : > { %v1450_v37 = vsel %vm1206_vm4, %v1391_v34, -inf }
 0x4fc   : > { %1451 = vmax.xlane.f32.xlu1 %v1450_v37 }
 0x501   : > { %v4593_v38 = vpop.f32.mrb[16].mxu0 }
 0x502   : > { %v3402_v39 = vpop.f32.mrb[17].mxu0 }
 0x503   : > { %v4595_v40 = vpop.f32.mrb[18].mxu0 }
 0x504   : > { %v3403_v41 = vpop.f32.mrb[19].mxu0 }
 0x509   : > { %v1440_v42 = vpop.f32.mrb[20].mxu0 }
 0x50a   : > { %v1441_v45 = vadd.f32 %v1440_v42, %v4534_v3  ;;  %v3414_v46 = vpop.f32.mrb[21].mxu0 }
 0x50b   : > { %v1443_v47 = vpop.f32.mrb[22].mxu0 }
 0x50c   : > { %v1444_v48 = vadd.f32 %v1443_v47, %v4537_v5  ;;  %v3415_v49 = vpop.f32.mrb[23].mxu0  ;;  %v1453_v50 = vsel %vm1206_vm4, %v1441_v45, -inf }
 0x50d   : > { %1454 = vmax.xlane.f32.xlu0 %v1453_v50 }
 0x50e   : > { %v1456_v51 = vsel %vm1206_vm4, %v1444_v48, -inf }
 0x511   : > { %1457 = vmax.xlane.f32.xlu0 %v1456_v51 }
 0x587   : > { %v1449_v53 = vpop.xlane.xlu0 %1448 }
 0x588   : > { %v1459_v56 = vsub.f32 %v1388_v26, %v1449_v53 }
 0x589   : > { %v1452_v57 = vpop.xlane.xlu1 %1451 }
 0x58a   : > { %v1463_v58 = vmul.f32 1.442695, %v1459_v56  ;;  %v1460_v59 = vsub.f32 %v1391_v34, %v1452_v57 }
 0x58c   : > { %3754 = vpow2.f32 %v1463_v58  ;;  %v1465_v60 = vmul.f32 1.442695, %v1460_v59 }
 0x58e   : > { %3756 = vpow2.f32 %v1465_v60 }
 0x596   : > { %v3755_v61 = vpop.eup %3754 }
 0x597   : > { %v1471_v62 = vsel %vm1206_vm4, %v3755_v61, 0.0 }
 0x598   : > { %v3757_v63 = vpop.eup %3756  ;;  %1472 = vadd.xlane.f32.xlu0 %v1471_v62 }
 0x599   : > { %v1474_v0 = vsel %vm1206_vm4, %v3757_v63, 0.0 }
 0x59a   : > { %1475 = vadd.xlane.f32.xlu1 %v1474_v0  ;;  %v1455_v1 = vpop.xlane.xlu0 %1454 }
 0x59b   : > { %v1461_v2 = vsub.f32 %v1441_v45, %v1455_v1 }
 0x59d   : > { %v1467_v4 = vmul.f32 1.442695, %v1461_v2 }
 0x59e   : > { %v1458_v9 = vpop.xlane.xlu0 %1457 }
 0x59f   : > { %3758 = vpow2.f32 %v1467_v4  ;;  %v1462_v10 = vsub.f32 %v1444_v48, %v1458_v9 }
 0x5a1   : > { %v1469_v11 = vmul.f32 1.442695, %v1462_v10 }
 0x5a3   : > { %3760 = vpow2.f32 %v1469_v11 }
 0x5a9   : > { %v3759_v7 = vpop.eup %3758 }
 0x5aa   : > { %v1477_v8 = vsel %vm1206_vm4, %v3759_v7, 0.0 }
 0x5ab   : > { %1542 = vrot.lane.b32.xlu1 %v4560_v31, %s4062_s19  ;;  %1478 = vadd.xlane.f32.xlu0 %v1477_v8 }
 0x5ad   : > { %v3761_v12 = vpop.eup %3760 }
 0x5ae   : > { %v1480_v13 = vsel %vm1206_vm4, %v3761_v12, 0.0 }
 0x5af   : > { %1591 = vrot.lane.b32.xlu1 %v4498_v44, %s4063_s23 }
 0x5c1   : > { %1494 = vrot.lane.b32.xlu0 %v4554_v52, %s4062_s19 }
 0x5c5   : > { %1589 = vrot.lane.b32.xlu0 %v4496_v43, %s4063_s23 }
 0x5d3   : > { %1481 = vadd.xlane.f32.xlu1 %v1480_v13 }
 0x5e4   : > { %1642 = vrot.lane.b32.xlu1 %v4505_v55, %s4063_s23 }
 0x5e8   : > { %1640 = vrot.lane.b32.xlu1 %v4503_v54, %s4063_s23 }
 0x625   : > { %v1473_v16 = vpop.xlane.xlu0 %1472 }
 0x627   : > { %v1476_v14 = vpop.xlane.xlu1 %1475 }
 0x628   : > { %3762 = vrcp.f32 %v1476_v14 }
 0x629   : > { %3764 = vrcp.f32 %v1473_v16 }
 0x62b   : > { %v1543_v15 = vpop.permute.xlu1 %1542 }
 0x62c   : > { %3423 = vmatpush3.bf16.msra.mxu0 %v1543_v15 }
 0x62d   : > { %3434 = vmatprep.subr.bf16.mxu0 %v4060_v27 }
 0x62f   : > { %v1592_v26 = vpop.permute.xlu1 %1591 }
 0x630   : > { %v1597_v28 = vsel %vm1111_vm1, %v1592_v26, 0 }
 0x632   : > { %v3763_v17 = vpop.eup %3762 }
 0x633   : > { %v3765_v19 = vpop.eup %3764  ;;  %v1488_v20 = vmul.f32 %v3763_v17, %v3757_v63 }
 0x634   : > { %v1487_v22 = vmul.f32 %v3765_v19, %v3755_v61 }
 0x636   : > { %v1491_v25 = vpack.c.bf16 %v1488_v20, %v1487_v22 }
 0x638   : > { %v1479_v18 = vpop.xlane.xlu0 %1478 }
 0x639   : > { %3766 = vrcp.f32 %v1479_v18 }
 0x63c   : > { %v1495_v24 = vpop.permute.xlu0 %1494 }
 0x63d   : > { %3417 = vmatpush3.bf16.msra.mxu1 %v1495_v24 }
 0x63e   : > { %3428 = vmatprep.subr.bf16.mxu1 %v4060_v27 }
 0x640   : > { %3419 = vmatmul.mubr.msk.bf16.vlgmr.msra.gmra.mrb[12].mxu1 %vm1206_vm4, %v1491_v25  ;;  %v1590_v33 = vpop.permute.xlu0 %1589 }
 0x641   : > { %3430 = vmatprep.mubr.msk.bf16.mxu1 %vm4061_vm0, %v4060_v27 }
 0x643   : > { %v3767_v35 = vpop.eup %3766 }
 0x644   : > { %v1489_v37 = vmul.f32 %v3767_v35, %v3759_v7 }
 0x646   : > { %3429 = vmatpush3.bf16.xpose.msra.mxu1 %v1597_v28 }
 0x647   : > { %3440 = vmatprep.subr.bf16.mxu1 %v4060_v27 }
 0x64d   : > { %3431 = vmatmul.mubr.msk.bf16.vlgmr.msra.gmra.mrb[16].mxu1 %vm1111_vm1, %v1590_v33 }
 0x64e   : > { %3442 = vmatprep.mubr.msk.bf16.mxu1 %vm4061_vm0, %v4060_v27 }
 0x660   : > { %v1482_v34 = vpop.xlane.xlu1 %1481 }
 0x661   : > { %3768 = vrcp.f32 %v1482_v34 }
 0x664   : > { %v1643_v41 = vpop.permute.xlu1 %1642 }
 0x665   : > { %v1648_v45 = vsel %vm1111_vm1, %v1643_v41, 0 }
 0x668   : > { %v1641_v46 = vpop.permute.xlu1 %1640 }
 0x66b   : > { %v3769_v36 = vpop.eup %3768 }
 0x66c   : > { %v1490_v39 = vmul.f32 %v3769_v36, %v3761_v12 }
 0x66e   : > { %v1492_v42 = vpack.c.bf16 %v1490_v39, %v1489_v37 }
 0x670   : > { %3425 = vmatmul.mubr.msk.bf16.vlgmr.msra.gmra.mrb[24].mxu0 %vm1206_vm4, %v1492_v42 }
 0x671   : > { %3435 = vmatpush3.bf16.xpose.msra.mxu0 %v1648_v45  ;;  %3436 = vmatprep.mubr.msk.bf16.mxu0 %vm4061_vm0, %v4060_v27 }
 0x672   : > { %3446 = vmatprep.subr.bf16.mxu0 %v4060_v27 }
 0x678   : > { %3437 = vmatmul.mubr.msk.bf16.vlgmr.msra.gmra.mrb[28].mxu0 %vm1111_vm1, %v1641_v46 }
 0x679   : > { %3448 = vmatprep.mubr.msk.bf16.mxu0 %vm4061_vm0, %v4060_v27 }
 0x713   : > { %v4635_v47 = vpop.f32.mrb[12].mxu1 }
 0x714   : > { %v3420_v48 = vpop.f32.mrb[13].mxu1 }
 0x715   : > { %v4637_v49 = vpop.f32.mrb[14].mxu1 }
 0x716   : > { %v3628_v50 = vpack.i.bf16 %v4637_v49, %v4635_v47  ;;  %v3421_v51 = vpop.f32.mrb[15].mxu1 }
 0x720   : > { %v1633_v53 = vpop.f32.mrb[16].mxu1 }
 0x721   : > { %v1634_v56 = vadd.f32 %v1633_v53, %v4534_v3  ;;  %v3432_v57 = vpop.f32.mrb[17].mxu1 }
 0x722   : > { %v1636_v58 = vpop.f32.mrb[18].mxu1 }
 0x723   : > { %v1637_v59 = vadd.f32 %v1636_v58, %v4537_v5  ;;  %v3433_v60 = vpop.f32.mrb[19].mxu1  ;;  %v1691_v61 = vsel %vm1206_vm4, %v1634_v56, -inf }
 0x724   : > { %1692 = vmax.xlane.f32.xlu0 %v1691_v61 }
 0x725   : > { %v1694_v62 = vsel %vm1206_vm4, %v1637_v59, -inf }
 0x726   : > { %1695 = vmax.xlane.f32.xlu1 %v1694_v62 }
 0x743   : > { %v4645_v63 = vpop.f32.mrb[24].mxu0 }
 0x744   : > { %v3426_v0 = vpop.f32.mrb[25].mxu0 }
 0x745   : > { %v4647_v1 = vpop.f32.mrb[26].mxu0 }
 0x746   : > { %v3633_v2 = vpack.i.bf16 %v4647_v1, %v4645_v63  ;;  %v3427_v4 = vpop.f32.mrb[27].mxu0 }
 0x74b   : > { %v1684_v7 = vpop.f32.mrb[28].mxu0 }
 0x74c   : > { %v1685_v8 = vadd.f32 %v1684_v7, %v4534_v3  ;;  %v3438_v9 = vpop.f32.mrb[29].mxu0 }
 0x74d   : > { %v1687_v10 = vpop.f32.mrb[30].mxu0 }
 0x74e   : > { %v1688_v11 = vadd.f32 %v1687_v10, %v4537_v5  ;;  %v3439_v12 = vpop.f32.mrb[31].mxu0  ;;  %v1697_v13 = vsel %vm1206_vm4, %v1685_v8, -inf }
 0x74f   : > { %1698 = vmax.xlane.f32.xlu0 %v1697_v13 }
 0x750   : > { %v1700_v14 = vsel %vm1206_vm4, %v1688_v11, -inf }
 0x753   : > { %1701 = vmax.xlane.f32.xlu0 %v1700_v14 }
 0x7b1   : > { %v1693_v15 = vpop.xlane.xlu0 %1692 }
 0x7b2   : > { %v1703_v16 = vsub.f32 %v1634_v56, %v1693_v15 }
 0x7b3   : > { %v1696_v17 = vpop.xlane.xlu1 %1695 }
 0x7b4   : > { %v1707_v18 = vmul.f32 1.442695, %v1703_v16  ;;  %v1704_v19 = vsub.f32 %v1637_v59, %v1696_v17 }
 0x7b6   : > { %3770 = vpow2.f32 %v1707_v18  ;;  %v1709_v20 = vmul.f32 1.442695, %v1704_v19 }
 0x7b8   : > { %3772 = vpow2.f32 %v1709_v20 }
 0x7c0   : > { %v3771_v22 = vpop.eup %3770 }
 0x7c1   : > { %v1715_v24 = vsel %vm1206_vm4, %v3771_v22, 0.0 }
 0x7c2   : > { %v3773_v25 = vpop.eup %3772  ;;  %1716 = vadd.xlane.f32.xlu0 %v1715_v24 }
 0x7c3   : > { %v1718_v26 = vsel %vm1206_vm4, %v3773_v25, 0.0 }
 0x7c4   : > { %1719 = vadd.xlane.f32.xlu1 %v1718_v26 }
 0x7d5   : > { %1784 = vrot.lane.b32.xlu1 %v4560_v31, %s4063_s23 }
 0x7d9   : > { %1833 = vrot.lane.b32.xlu1 %v4498_v44, %s4064_s26 }
 0x7dc   : > { %v1699_v28 = vpop.xlane.xlu0 %1698 }
 0x7dd   : > { %v1705_v33 = vsub.f32 %v1685_v8, %v1699_v28 }
 0x7df   : > { %v1711_v34 = vmul.f32 1.442695, %v1705_v33 }
 0x7e0   : > { %v1702_v35 = vpop.xlane.xlu0 %1701 }
 0x7e1   : > { %3774 = vpow2.f32 %v1711_v34  ;;  %v1706_v36 = vsub.f32 %v1688_v11, %v1702_v35 }
 0x7e3   : > { %v1713_v39 = vmul.f32 1.442695, %v1706_v36 }
 0x7e5   : > { %3776 = vpow2.f32 %v1713_v39 }
 0x7eb   : > { %v3775_v37 = vpop.eup %3774 }
 0x7ec   : > { %v1721_v41 = vsel %vm1206_vm4, %v3775_v37, 0.0 }
 0x7ed   : > { %1722 = vadd.xlane.f32.xlu0 %v1721_v41 }
 0x7ef   : > { %v3777_v42 = vpop.eup %3776 }
 0x7f0   : > { %v1724_v45 = vsel %vm1206_vm4, %v3777_v42, 0.0 }
 0x7fd   : > { %1725 = vadd.xlane.f32.xlu1 %v1724_v45 }
 0x803   : > { %1737 = vrot.lane.b32.xlu0 %v4554_v52, %s4063_s23 }
 0x807   : > { %1831 = vrot.lane.b32.xlu0 %v4496_v43, %s4064_s26 }
 0x80e   : > { %1884 = vrot.lane.b32.xlu1 %v4505_v55, %s4064_s26 }
 0x812   : > { %1882 = vrot.lane.b32.xlu1 %v4503_v54, %s4064_s26 }
 0x84f   : > { %v1717_v48 = vpop.xlane.xlu0 %1716 }
 0x851   : > { %v1720_v44 = vpop.xlane.xlu1 %1719 }
 0x852   : > { %3778 = vrcp.f32 %v1720_v44 }
 0x853   : > { %3780 = vrcp.f32 %v1717_v48 }
 0x855   : > { %v1785_v46 = vpop.permute.xlu1 %1784 }
 0x856   : > { %3447 = vmatpush3.bf16.msra.mxu0 %v1785_v46 }
 0x857   : > { %3458 = vmatprep.subr.bf16.mxu0 %v4060_v27 }
 0x859   : > { %v1834_v54 = vpop.permute.xlu1 %1833 }
 0x85a   : > { %v1839_v55 = vsel %vm1111_vm1, %v1834_v54, 0 }
 0x85c   : > { %v3779_v51 = vpop.eup %3778 }
 0x85d   : > { %v3781_v56 = vpop.eup %3780  ;;  %v1732_v57 = vmul.f32 %v3779_v51, %v3773_v25 }
 0x85e   : > { %v1731_v58 = vmul.f32 %v3781_v56, %v3771_v22 }
 0x860   : > { %v1735_v59 = vpack.c.bf16 %v1732_v57, %v1731_v58 }
 0x87a   : > { %v1723_v53 = vpop.xlane.xlu0 %1722 }
 0x87b   : > { %3782 = vrcp.f32 %v1723_v53 }
 0x87e   : > { %v1738_v43 = vpop.permute.xlu0 %1737 }
 0x87f   : > { %3441 = vmatpush3.bf16.msra.mxu1 %v1738_v43 }
 0x880   : > { %3452 = vmatprep.subr.bf16.mxu1 %v4060_v27 }
 0x882   : > { %3443 = vmatmul.mubr.msk.bf16.vlgmr.msra.gmra.mrb[20].mxu1 %vm1206_vm4, %v1735_v59  ;;  %v1832_v61 = vpop.permute.xlu0 %1831 }
 0x883   : > { %3454 = vmatprep.mubr.msk.bf16.mxu1 %vm4061_vm0, %v4060_v27 }
 0x885   : > { %v3783_v62 = vpop.eup %3782 }
 0x886   : > { %v1733_v4 = vmul.f32 %v3783_v62, %v3775_v37 }
 0x888   : > { %3453 = vmatpush3.bf16.xpose.msra.mxu1 %v1839_v55 }
 0x889   : > { %3464 = vmatprep.subr.bf16.mxu1 %v4060_v27 }
 0x88a   : > { %v1726_v60 = vpop.xlane.xlu1 %1725 }
 0x88b   : > { %3784 = vrcp.f32 %v1726_v60 }
 0x88e   : > { %v1885_v8 = vpop.permute.xlu1 %1884 }
 0x88f   : > { %3455 = vmatmul.mubr.msk.bf16.vlgmr.msra.gmra.mrb[24].mxu1 %vm1111_vm1, %v1832_v61  ;;  %v1890_v10 = vsel %vm1111_vm1, %v1885_v8, 0 }
 0x890   : > { %3466 = vmatprep.mubr.msk.bf16.mxu1 %vm4061_vm0, %v4060_v27 }
 0x892   : > { %v1883_v11 = vpop.permute.xlu1 %1882 }
 0x895   : > { %v3785_v0 = vpop.eup %3784 }
 0x896   : > { %v1734_v7 = vmul.f32 %v3785_v0, %v3777_v42 }
 0x898   : > { %v1736_v9 = vpack.c.bf16 %v1734_v7, %v1733_v4 }
 0x89a   : > { %3449 = vmatmul.mubr.msk.bf16.vlgmr.msra.gmra.mrb[32].mxu0 %vm1206_vm4, %v1736_v9 }
 0x89b   : > { %3459 = vmatpush3.bf16.xpose.msra.mxu0 %v1890_v10  ;;  %3460 = vmatprep.mubr.msk.bf16.mxu0 %vm4061_vm0, %v4060_v27 }
 0x89c   : > { %3470 = vmatprep.subr.bf16.mxu0 %v4060_v27 }
 0x8a2   : > { %3461 = vmatmul.mubr.msk.bf16.vlgmr.msra.gmra.mrb[36].mxu0 %vm1111_vm1, %v1883_v11 }
 0x8a3   : > { %3472 = vmatprep.mubr.msk.bf16.mxu0 %vm4061_vm0, %v4060_v27 }
 0x955   : > { %v1777_v12 = vpop.f32.mrb[20].mxu1 }
 0x956   : > { %v3444_v13 = vpop.f32.mrb[21].mxu1 }
 0x957   : > { %v1780_v14 = vpop.f32.mrb[22].mxu1 }
 0x958   : > { %v3638_v15 = vpack.i.bf16 %v1780_v14, %v1777_v12  ;;  %v3445_v16 = vpop.f32.mrb[23].mxu1 }
 0x962   : > { %v1875_v17 = vpop.f32.mrb[24].mxu1 }
 0x963   : > { %v1876_v18 = vadd.f32 %v1875_v17, %v4534_v3  ;;  %v3456_v19 = vpop.f32.mrb[25].mxu1 }
 0x964   : > { %v1878_v20 = vpop.f32.mrb[26].mxu1  ;;  %v3691_v19 = vld [vmem:[%s4381_s14 + $0x8] sm:$0xff]  }
 0x965   : > { %v1879_v22 = vadd.f32 %v1878_v20, %v4537_v5  ;;  %v3457_v24 = vpop.f32.mrb[27].mxu1  ;;  %v1933_v25 = vsel %vm1206_vm4, %v1876_v18, -inf  ;;  %v3692_v20 = vld [vmem:[%s4381_s14 + $0x10] sm:$0xff]  }
 0x966   : > { %1934 = vmax.xlane.f32.xlu0 %v1933_v25  ;;  %v3694_v24 = vld [vmem:[%s4381_s14 + $0x20] sm:$0xff]   ;;  %v3695_v25 = vld [vmem:[%s4381_s14 + $0x28] sm:$0xff]  }
 0x967   : > { %v1936_v26 = vsel %vm1206_vm4, %v1879_v22, -inf }
 0x968   : > { %1937 = vmax.xlane.f32.xlu1 %v1936_v26  ;;  %v3696_v26 = vld [vmem:[%s4381_s14 + $0x30] sm:$0xff]  }
 0x96d   : > { %v1824_v27 = vpop.f32.mrb[32].mxu0 }
 0x96e   : > { %v3450_v28 = vpop.f32.mrb[33].mxu0 }
 0x96f   : > { %v1827_v33 = vpop.f32.mrb[34].mxu0 }
 0x970   : > { %v3643_v34 = vpack.i.bf16 %v1827_v33, %v1824_v27  ;;  %v3451_v35 = vpop.f32.mrb[35].mxu0 }
 0x975   : > { %v1926_v36 = vpop.f32.mrb[36].mxu0 }
 0x976   : > { %v1927_v37 = vadd.f32 %v1926_v36, %v4534_v3  ;;  %v3462_v39 = vpop.f32.mrb[37].mxu0  ;;  %v3697_v36 = vld [vmem:[%s4381_s14 + $0x38] sm:$0xff]  }
 0x977   : > { %v1929_v41 = vpop.f32.mrb[38].mxu0 }
 0x978   : > { %v1930_v42 = vadd.f32 %v1929_v41, %v4537_v5  ;;  %v3463_v45 = vpop.f32.mrb[39].mxu0  ;;  %v1939_v44 = vsel %vm1206_vm4, %v1927_v37, -inf }
 0x979   : > { %1940 = vmax.xlane.f32.xlu0 %v1939_v44 }
 0x97a   : > { %v1942_v46 = vsel %vm1206_vm4, %v1930_v42, -inf }
 0x97d   : > { %1943 = vmax.xlane.f32.xlu0 %v1942_v46 }
 0x9f3   : > { %v1935_v48 = vpop.xlane.xlu0 %1934 }
 0x9f4   : > { %v1945_v51 = vsub.f32 %v1876_v18, %v1935_v48  ;;  %v3690_v18 = vld [vmem:[%s4381_s14] sm:$0xff]  }
 0x9f5   : > { %v1938_v53 = vpop.xlane.xlu1 %1937 }
 0x9f6   : > { %v1949_v56 = vmul.f32 1.442695, %v1945_v51  ;;  %v1946_v57 = vsub.f32 %v1879_v22, %v1938_v53  ;;  %v3693_v22 = vld [vmem:[%s4381_s14 + $0x18] sm:$0xff]  }
 0x9f8   : > { %3786 = vpow2.f32 %v1949_v56  ;;  %v1951_v58 = vmul.f32 1.442695, %v1946_v57 }
 0x9fa   : > { %3788 = vpow2.f32 %v1951_v58 }
 0xa02   : > { %v3787_v3 = vpop.eup %3786 }
 0xa03   : > { %v1957_v43 = vsel %vm1206_vm4, %v3787_v3, 0.0 }
 0xa04   : > { %v3789_v59 = vpop.eup %3788  ;;  %1958 = vadd.xlane.f32.xlu0 %v1957_v43 }
 0xa05   : > { %v1960_v5 = vsel %vm1206_vm4, %v3789_v59, 0.0 }
 0xa06   : > { %1961 = vadd.xlane.f32.xlu1 %v1960_v5  ;;  %v1941_v54 = vpop.xlane.xlu0 %1940 }
 0xa07   : > { %v1947_v55 = vsub.f32 %v1927_v37, %v1941_v54 }
 0xa09   : > { %v1953_v60 = vmul.f32 1.442695, %v1947_v55 }
 0xa0a   : > { %v1944_v61 = vpop.xlane.xlu0 %1943 }
 0xa0b   : > { %3790 = vpow2.f32 %v1953_v60  ;;  %v1948_v62 = vsub.f32 %v1930_v42, %v1944_v61 }
 0xa0d   : > { %v1955_v0 = vmul.f32 1.442695, %v1948_v62 }
 0xa0f   : > { %3792 = vpow2.f32 %v1955_v0 }
 0xa15   : > { %v3791_v4 = vpop.eup %3790 }
 0xa16   : > { %v1963_v7 = vsel %vm1206_vm4, %v3791_v4, 0.0 }
 0xa17   : > { %1964 = vadd.xlane.f32.xlu0 %v1963_v7 }
 0xa19   : > { %v3793_v8 = vpop.eup %3792 }
 0xa1a   : > { %v1966_v9 = vsel %vm1206_vm4, %v3793_v8, 0.0 }
 0xa1b   : > { %1967 = vadd.xlane.f32.xlu1 %v1966_v9 }
 0xa2c   : > { %2026 = vrot.lane.b32.xlu1 %v4560_v31, %s4064_s26 }
 0xa2d   : > { %1979 = vrot.lane.b32.xlu0 %v4554_v52, %s4064_s26 }
 0xa30   : > { %3629 = vrot.lane.b32.xlu1 %v3628_v50, %s4064_s26 }
 0xa31   : > { %3639 = vrot.lane.b32.xlu0 %v3638_v15, %s4063_s23 }
 0xa34   : > { %3634 = vrot.lane.b32.xlu1 %v3633_v2, %s4064_s26 }
 0xa38   : > { %3644 = vrot.lane.b32.xlu1 %v3643_v34, %s4063_s23 }
 0xa91   : > { %v1959_v11 = vpop.xlane.xlu0 %1958 }
 0xa93   : > { %v1962_v10 = vpop.xlane.xlu1 %1961 }
 0xa94   : > { %3794 = vrcp.f32 %v1962_v10 }
 0xa95   : > { %3796 = vrcp.f32 %v1959_v11 }
 0xa9e   : > { %v3795_v31 = vpop.eup %3794 }
 0xa9f   : > { %v3797_v12 = vpop.eup %3796  ;;  %v1974_v13 = vmul.f32 %v3795_v31, %v3789_v59 }
 0xaa0   : > { %v1973_v47 = vmul.f32 %v3797_v12, %v3787_v3 }
 0xaa2   : > { %v1977_v63 = vpack.c.bf16 %v1974_v13, %v1973_v47 }
 0xaa4   : > { %v1965_v52 = vpop.xlane.xlu0 %1964 }
 0xaa5   : > { %3798 = vrcp.f32 %v1965_v52 }
 0xaa8   : > { %v1968_v49 = vpop.xlane.xlu1 %1967  ;;  %v1980_v50 = vpop.permute.xlu0 %1979 }
 0xaa9   : > { %3800 = vrcp.f32 %v1968_v49  ;;  %3465 = vmatpush3.bf16.msra.mxu1 %v1980_v50 }
 0xaaa   : > { %3476 = vmatprep.subr.bf16.mxu1 %v3690_v18 }
 0xaac   : > { %v2027_v1 = vpop.permute.xlu1 %2026  ;;  %3467 = vmatmul.mubr.msk.bf16.vlgmr.msra.gmra.mrb[28].mxu1 %vm1206_vm4, %v1977_v63  ;;  %v3640_v51 = vpop.permute.xlu0 %3639 }
 0xaad   : > { %3471 = vmatpush3.bf16.msra.mxu0 %v2027_v1  ;;  %3477 = vmatpush3.bf16.msra.mxu1 %v3690_v18  ;;  %v3642_v57 = vunpack.i.h.bf16 %v3640_v51  ;;  %v3641_v58 = vunpack.i.l.bf16 %v3640_v51  ;;  %v3819_v18 = vld [vmem:[#allocation2 + $0x8] sm:$0xff] }
 0xaae   : > { %3478 = vmatprep.subr.bf16.mxu1 %v3691_v19 }
 0xaaf   : > { %v3799_v2 = vpop.eup %3798 }
 0xab0   : > { %v1975_v15 = vmul.f32 %v3799_v2, %v3791_v4  ;;  %v3630_v44 = vpop.permute.xlu1 %3629 }
 0xab1   : > { %3479 = vmatpush3.bf16.msra.mxu1 %v3691_v19  ;;  %v3632_v46 = vunpack.i.h.bf16 %v3630_v44  ;;  %v3631_v48 = vunpack.i.l.bf16 %v3630_v44 }
 0xab2   : > { %3480 = vmatprep.subr.bf16.mxu1 %v3692_v20 }
 0xab3   : > { %v3801_v14 = vpop.eup %3800  ;;  %v2122_v53 = vsel %vm1111_vm1, %v4587_v23, %v3632_v46  ;;  %v2121_v56 = vsel %vm1111_vm1, %v4585_v21, %v3631_v48 }
 0xab4   : > { %v1976_v16 = vmul.f32 %v3801_v14, %v3793_v8  ;;  %v3635_v43 = vpop.permute.xlu1 %3634  ;;  %v2126_v54 = vsel %vm2125_vm5, %v2121_v56, %v3641_v58  ;;  %v2127_v55 = vsel %vm2125_vm5, %v2122_v53, %v3642_v57 }
 0xab5   : > { %3481 = vmatpush3.bf16.msra.mxu1 %v3692_v20  ;;  %v3637_v21 = vunpack.i.h.bf16 %v3635_v43  ;;  %v3636_v0 = vunpack.i.l.bf16 %v3635_v43  ;;  %v3706_v43 = vld [vmem:[%s4437_s24 + $0x24] ss:$8 sps:$4 sm:$0xff]  }
 0xab6   : > { %v1978_v17 = vpack.c.bf16 %v1976_v16, %v1975_v15  ;;  %3482 = vmatprep.subr.bf16.mxu1 %v3693_v22  ;;  %v3818_v16 = vld [vmem:[#allocation2] sm:$0xff] }
 0xab7   : > { %v2124_v9 = vsel %vm1111_vm1, %v4595_v40, %v3637_v21  ;;  %v2123_v10 = vsel %vm1111_vm1, %v4593_v38, %v3636_v0  ;;  %v3206_v40 = vld [vmem:[%s4966_s1] ss:$0 sm:$0xff]  ;;  %v3721_v0 = vld [vmem:[%s4437_s24 + $0x74] ss:$8 sps:$4 sm:$0xff]  }
 0xab8   : > { %3473 = vmatmul.mubr.msk.bf16.vlgmr.msra.gmra.mrb[40].mxu0 %vm1206_vm4, %v1978_v17  ;;  %v3645_v62 = vpop.permute.xlu1 %3644  ;;  %v3716_v21 = vld [vmem:[%s4437_s24 + $0x60] ss:$8 sps:$4 sm:$0xff]  }
 0xab9   : > { %2470 = vmatprep.mubr.bf16.mxu0 %v4059_v6  ;;  %3483 = vmatpush3.bf16.msra.mxu1 %v3693_v22  ;;  %v3647_v4 = vunpack.i.h.bf16 %v3645_v62  ;;  %v3646_v7 = vunpack.i.l.bf16 %v3645_v62  ;;  %v3820_v22 = vld [vmem:[#allocation2 + $0x10] sm:$0xff]  ;;  %v3718_v62 = vld [vmem:[%s4437_s24 + $0x64] ss:$8 sps:$4 sm:$0xff]  }
 0xaba   : > { %3484 = vmatprep.subr.bf16.mxu1 %v3694_v24 }
 0xabb   : > { %v2128_v52 = vsel %vm2125_vm5, %v2123_v10, %v3646_v7  ;;  %v2129_v12 = vsel %vm2125_vm5, %v2124_v9, %v3647_v4  ;;  %v3719_v4 = vld [vmem:[%s4437_s24 + $0x70] ss:$8 sps:$4 sm:$0xff]   ;;  %v3722_v7 = vld [vmem:[%s4442_s6 + $0x40] sm:$0xff]   ;;  %v3724_v9 = vld [vmem:[%s4442_s6 + $0x48] sm:$0xff]  }
 0xabc   : > { %v3725_v10 = vld [vmem:[%s4442_s6 + $0x8] sm:$0xff]  }
 0xabd   : > { %3485 = vmatpush3.bf16.msra.mxu1 %v3694_v24 }
 0xabe   : > { %3486 = vmatprep.subr.bf16.mxu1 %v3695_v25 }
 0xac1   : > { %3487 = vmatpush3.bf16.msra.mxu1 %v3695_v25  ;;  %v3821_v25 = vld [vmem:[#allocation2 + $0x18] sm:$0xff] }
 0xac2   : > { %3488 = vmatprep.subr.bf16.mxu1 %v3696_v26 }
 0xac5   : > { %3489 = vmatpush3.bf16.msra.mxu1 %v3696_v26 }
 0xac6   : > { %3490 = vmatprep.subr.bf16.mxu1 %v3697_v36 }
 0xac9   : > { %3491 = vmatpush3.bf16.msra.mxu1 %v3697_v36 }
 0xaca   : > { %3322 = vmatprep.subr.bf16.mxu1 %v3722_v7 }
 0xb7f   : > { %v2019_v27 = vpop.f32.mrb[28].mxu1 }
 0xb80   : > { %v3468_v28 = vpop.f32.mrb[29].mxu1 }
 0xb81   : > { %v2022_v33 = vpop.f32.mrb[30].mxu1  ;;  %v3700_v28 = vld [vmem:[%s4437_s24 + $0x4] ss:$8 sps:$4 sm:$0xff]  }
 0xb82   : > { %v3648_v34 = vpack.i.bf16 %v2022_v33, %v2019_v27  ;;  %v3469_v35 = vpop.f32.mrb[31].mxu1  ;;  %v3698_v27 = vld [vmem:[%s4437_s24] ss:$8 sps:$4 sm:$0xff]   ;;  %v3703_v33 = vld [vmem:[%s4437_s24 + $0x14] ss:$8 sps:$4 sm:$0xff]   ;;  %2438 = vmatprep.subr.bf16.mxu0 %v3700_v28 }
 0xb83   : > { %2439 = vmatpush1.bf16.msra.mxu0 %v3698_v27 }
 0xb84   : > { %3649 = vrot.lane.b32.xlu0 %v3648_v34, %s4062_s19  ;;  %v3701_v34 = vld [vmem:[%s4437_s24 + $0x10] ss:$8 sps:$4 sm:$0xff]   ;;  %2440 = vmatprep.subr.bf16.mxu0 %v3703_v33  ;;  %v3216_v33 = vld [vmem:[%s4970_s18] ss:$0 sm:$0xff] }
 0xb87   : > { %2441 = vmatpush1.bf16.msra.mxu0 %v3701_v34 }
 0xb88   : > { %2442 = vmatprep.subr.bf16.mxu0 %v3706_v43  ;;  %v2346_v43 = vld [vmem:[%s4390_s30] sm:$0x3]  ;;  %s4971_s30 = scalar_lea.vmem [#allocation7], %s4377_s0 }
 0xb8b   : > { %v2066_v37 = vpop.f32.mrb[40].mxu0 }
 0xb8c   : > { %v3474_v39 = vpop.f32.mrb[41].mxu0 }
 0xb8d   : > { %v2069_v41 = vpop.f32.mrb[42].mxu0 }
 0xb8e   : > { %v3653_v42 = vpack.i.bf16 %v2069_v41, %v2066_v37  ;;  %v3475_v45 = vpop.f32.mrb[43].mxu0 }
 0xb90   : > { %3654 = vrot.lane.b32.xlu1 %v3653_v42, %s4062_s19 }
 0xbf6   : > { %v3650_v3 = vpop.permute.xlu0 %3649 }
 0xbf7   : > { %v3652_v59 = vunpack.i.h.bf16 %v3650_v3  ;;  %v3651_v5 = vunpack.i.l.bf16 %v3650_v3 }
 0xbf9   : > { %v2131_v60 = vsel %vm2130_vm6, %v2126_v54, %v3651_v5  ;;  %v2132_v61 = vsel %vm2130_vm6, %v2127_v55, %v3652_v59  ;;  %v3704_v59 = vld [vmem:[%s4437_s24 + $0x20] ss:$8 sps:$4 sm:$0xff]   ;;  %v3709_v5 = vld [vmem:[%s4437_s24 + $0x34] ss:$8 sps:$4 sm:$0xff]   ;;  %v3707_v54 = vld [vmem:[%s4437_s24 + $0x30] ss:$8 sps:$4 sm:$0xff]  }
 0xbfa   : > { %v2135_v23 = vpack.c.bf16 %v2132_v61, %v2131_v60  ;;  %2443 = vmatpush1.bf16.msra.mxu0 %v3704_v59  ;;  %v3712_v55 = vld [vmem:[%s4437_s24 + $0x44] ss:$8 sps:$4 sm:$0xff]   ;;  %v3710_v60 = vld [vmem:[%s4437_s24 + $0x40] ss:$8 sps:$4 sm:$0xff]   ;;  %v3715_v61 = vld [vmem:[%s4437_s24 + $0x54] ss:$8 sps:$4 sm:$0xff]   ;;  %v2355_v59 = vrot.slane %v2346_v43, %v857_v32 }
 0xbfb   : > { %2444 = vmatprep.subr.bf16.mxu0 %v3709_v5 }
 0xbfc   : > { %3492 = vmatprep.mubr.bf16.mxu1 %v2135_v23  ;;  %v3713_v23 = vld [vmem:[%s4437_s24 + $0x50] ss:$8 sps:$4 sm:$0xff]  }
 0xbfe   : > { %2445 = vmatpush1.bf16.msra.mxu0 %v3707_v54 }
 0xbff   : > { %2446 = vmatprep.subr.bf16.mxu0 %v3712_v55 }
 0xc02   : > { %v3655_v8 = vpop.permute.xlu1 %3654  ;;  %2447 = vmatpush1.bf16.msra.mxu0 %v3710_v60 }
 0xc03   : > { %v3657_v11 = vunpack.i.h.bf16 %v3655_v8  ;;  %v3656_v31 = vunpack.i.l.bf16 %v3655_v8  ;;  %2448 = vmatprep.subr.bf16.mxu0 %v3715_v61  ;;  %v3723_v8 = vld [vmem:[%s4442_s6] sm:$0xff]  }
 0xc05   : > { %v2134_v13 = vsel %vm2130_vm6, %v2129_v12, %v3657_v11  ;;  %v2133_v47 = vsel %vm2130_vm6, %v2128_v52, %v3656_v31  ;;  %v3726_v11 = vld [vmem:[%s4442_s6 + $0x50] sm:$0xff]   ;;  %v3728_v52 = vld [vmem:[%s4442_s6 + $0x58] sm:$0xff]  }
 0xc06   : > { %v2136_v49 = vpack.c.bf16 %v2134_v13, %v2133_v47  ;;  %2449 = vmatpush1.bf16.msra.mxu0 %v3713_v23  ;;  %v3727_v31 = vld [vmem:[%s4442_s6 + $0x10] sm:$0xff]   ;;  %v3729_v12 = vld [vmem:[%s4442_s6 + $0x18] sm:$0xff]   ;;  %v3730_v13 = vld [vmem:[%s4442_s6 + $0x60] sm:$0xff]  }
 0xc07   : > { %2450 = vmatprep.subr.bf16.mxu0 %v3718_v62  ;;  %v3731_v47 = vld [vmem:[%s4442_s6 + $0x20] sm:$0xff]  }
 0xc08   : > { %3493 = vmatmul.mubr.bf16.vlgmr.msra.gmra.mrb[32].mxu1 %v2136_v49  ;;  %v3732_v49 = vld [vmem:[%s4442_s6 + $0x68] sm:$0xff]  }
 0xc09   : > { %3323 = vmatpush3.bf16.msra.mxu1 %v3723_v8 }
 0xc0a   : > { %2451 = vmatpush1.bf16.msra.mxu0 %v3716_v21  ;;  %3324 = vmatprep.subr.bf16.mxu1 %v3724_v9 }
 0xc0b   : > { %2452 = vmatprep.subr.bf16.mxu0 %v3721_v0 }
 0xc0d   : > { %3325 = vmatpush3.bf16.msra.mxu1 %v3725_v10 }
 0xc0e   : > { %2453 = vmatpush1.bf16.msra.mxu0 %v3719_v4  ;;  %3326 = vmatprep.subr.bf16.mxu1 %v3726_v11 }
 0xc11   : > { %3327 = vmatpush3.bf16.msra.mxu1 %v3727_v31 }
 0xc12   : > { %3328 = vmatprep.subr.bf16.mxu1 %v3728_v52 }
 0xc15   : > { %3329 = vmatpush3.bf16.msra.mxu1 %v3729_v12 }
 0xc16   : > { %3330 = vmatprep.subr.bf16.mxu1 %v3730_v13 }
 0xc19   : > { %3331 = vmatpush3.bf16.msra.mxu1 %v3731_v47 }
 0xc1a   : > { %3332 = vmatprep.subr.bf16.mxu1 %v3732_v49 }
 0xcdb   : > { %v3494_v50 = vpop.f32.mrb[32].mxu1 }
 0xcdc   : > { %v2242_v63 = vpop.f32.mrb[33].mxu1  ;;  %v2251_v14 = vadd.f32 %v3494_v50, %v3206_v40 }
 0xcdd   : > { %v2243_v38 = vadd.f32 %v3206_v40, %v2242_v63  ;;  %v3495_v1 = vpop.f32.mrb[34].mxu1 }
 0xcde   : > { %v2245_v2 = vpop.f32.mrb[35].mxu1  ;;  %v2254_v20 = vadd.f32 %v3495_v1, %v3206_v40  ;;  %v2259_v24 = vadd.f32 %v3820_v22, %v2251_v14  ;;  %v3215_v22 = vld [vmem:[%s4968_s13] ss:$0 sm:$0xff] }
 0xcdf   : > { %v2246_v15 = vadd.f32 %v3206_v40, %v2245_v2  ;;  %v2257_v17 = vadd.f32 %v3818_v16, %v2243_v38 }
 0xce0   : > { %v2260_v26 = vadd.f32 %v3821_v25, %v2254_v20 }
 0xce1   : > { %2263 = vadd.xlane.f32.xlu0 %v2257_v17  ;;  %v2258_v19 = vadd.f32 %v3819_v18, %v2246_v15 }
 0xce3   : > { %2265 = vadd.xlane.f32.xlu1 %v2258_v19 }
 0xce5   : > { %2267 = vadd.xlane.f32.xlu0 %v2259_v24 }
 0xce9   : > { %2269 = vadd.xlane.f32.xlu0 %v2260_v26 }
 0xd6e   : > { %v2264_v35 = vpop.xlane.xlu0 %2263 }
 0xd6f   : > { %v2272_v36 = vmul.f32 0.0078125, %v2264_v35 }
 0xd70   : > { %v2266_v37 = vpop.xlane.xlu1 %2265 }
 0xd71   : > { %v4753_v39 = vsub.f32 %v2257_v17, %v2272_v36  ;;  %v2273_v41 = vmul.f32 0.0078125, %v2266_v37 }
 0xd72   : > { %v2268_v42 = vpop.xlane.xlu0 %2267 }
 0xd73   : > { %v4755_v45 = vsub.f32 %v2258_v19, %v2273_v41  ;;  %v2274_v44 = vmul.f32 0.0078125, %v2268_v42  ;;  %v2280_v46 = vmul.f32 %v4753_v39, %v4753_v39 }
 0xd75   : > { %v4759_v48 = vsub.f32 %v2259_v24, %v2274_v44  ;;  %2284 = vadd.xlane.f32.xlu0 %v2280_v46  ;;  %v2281_v51 = vmul.f32 %v4755_v45, %v4755_v45 }
 0xd76   : > { %v2270_v53 = vpop.xlane.xlu0 %2269 }
 0xd77   : > { %v2275_v56 = vmul.f32 0.0078125, %v2270_v53  ;;  %2286 = vadd.xlane.f32.xlu1 %v2281_v51  ;;  %v2282_v57 = vmul.f32 %v4759_v48, %v4759_v48  ;;  %v3733_v53 = vld [vmem:[%s4442_s6 + $0x28] sm:$0xff]  }
 0xd78   : > { %3333 = vmatpush3.bf16.msra.mxu1 %v3733_v53 }
 0xd79   : > { %v4765_v58 = vsub.f32 %v2260_v26, %v2275_v56  ;;  %2288 = vadd.xlane.f32.xlu0 %v2282_v57  ;;  %v3734_v56 = vld [vmem:[%s4442_s6 + $0x70] sm:$0xff]  }
 0xd7a   : > { %v3735_v57 = vld [vmem:[%s4442_s6 + $0x30] sm:$0xff]   ;;  %3334 = vmatprep.subr.bf16.mxu1 %v3734_v56 }
 0xd7b   : > { %v2283_v3 = vmul.f32 %v4765_v58, %v4765_v58 }
 0xd7c   : > { %3335 = vmatpush3.bf16.msra.mxu1 %v3735_v57 }
 0xd7d   : > { %2290 = vadd.xlane.f32.xlu1 %v2283_v3  ;;  %v3737_v3 = vld [vmem:[%s4442_s6 + $0x38] sm:$0xff]  }
 0xe02   : > { %v2285_v40 = vpop.xlane.xlu0 %2284 }
 0xe03   : > { %v2292_v50 = vmul.f32 0.0078125, %v2285_v40 }
 0xe04   : > { %v2287_v63 = vpop.xlane.xlu1 %2286 }
 0xe05   : > { %v2296_v38 = vadd.f32 1e-05, %v2292_v50  ;;  %v2293_v1 = vmul.f32 0.0078125, %v2287_v63 }
 0xe06   : > { %v2289_v2 = vpop.xlane.xlu0 %2288 }
 0xe07   : > { %3802 = vrsqrt.f32 %v2296_v38  ;;  %v2297_v14 = vadd.f32 1e-05, %v2293_v1  ;;  %v2294_v15 = vmul.f32 0.0078125, %v2289_v2  ;;  %v3233_v2 = vld [vmem:[%s4971_s30] ss:$0 sm:$0xff] }
 0xe09   : > { %3804 = vrsqrt.f32 %v2297_v14  ;;  %v2298_v16 = vadd.f32 1e-05, %v2294_v15 }
 0xe0a   : > { %v2291_v17 = vpop.xlane.xlu1 %2290 }
 0xe0b   : > { %3806 = vrsqrt.f32 %v2298_v16  ;;  %v2295_v18 = vmul.f32 0.0078125, %v2291_v17 }
 0xe0d   : > { %v2299_v19 = vadd.f32 1e-05, %v2295_v18 }
 0xe0f   : > { %3808 = vrsqrt.f32 %v2299_v19 }
 0xe11   : > { %v3803_v20 = vpop.eup %3802 }
 0xe12   : > { %v2304_v24 = vmul.f32 %v3803_v20, %v4753_v39 }
 0xe13   : > { %v3805_v25 = vpop.eup %3804 }
 0xe14   : > { %v2305_v26 = vmul.f32 %v3805_v25, %v4755_v45  ;;  %v2314_v27 = vmul.f32 %v3215_v22, %v2304_v24 }
 0xe15   : > { %v3807_v28 = vpop.eup %3806 }
 0xe16   : > { %v2315_v34 = vmul.f32 %v3215_v22, %v2305_v26  ;;  %v4804_v35 = vadd.f32 %v3216_v33, %v2314_v27  ;;  %v2306_v37 = vmul.f32 %v3807_v28, %v4759_v48 }
 0xe18   : > { %v4806_v36 = vadd.f32 %v3216_v33, %v2315_v34  ;;  %v2316_v45 = vmul.f32 %v3215_v22, %v2306_v37 }
 0xe19   : > { %v3809_v39 = vpop.eup %3808 }
 0xe1a   : > { %v2328_v41 = vpack.c.bf16 %v4806_v36, %v4804_v35  ;;  %v2307_v42 = vmul.f32 %v3809_v39, %v4765_v58  ;;  %v4815_v51 = vadd.f32 %v3216_v33, %v2316_v45  ;;  %v3736_v58 = vld [vmem:[%s4442_s6 + $0x78] sm:$0xff]  }
 0xe1b   : > { %3336 = vmatprep.subr.bf16.mxu1 %v3736_v58 }
 0xe1c   : > { %2471 = vmatmul.mubr.bf16.vlgmr.msra.gmra.mrb[44].mxu0 %v2328_v41  ;;  %v2317_v44 = vmul.f32 %v3215_v22, %v2307_v42  ;;  %3337 = vmatpush3.bf16.msra.mxu1 %v3737_v3 }
 0xe1d   : > { %2480 = vmatprep.mubr.bf16.mxu0 %v4059_v6  ;;  %v2351_v6 = vrot.slane %v2346_v43, %v853_v30 }
 0xe1e   : > { %v4813_v46 = vadd.f32 %v3216_v33, %v2317_v44 }
 0xe20   : > { %v2329_v48 = vpack.c.bf16 %v4813_v46, %v4815_v51 }
 0xe24   : > { %2481 = vmatmul.mubr.bf16.gmra.mrb[48].mxu0 %v2329_v48 }
 0xeef   : > { %v2472_v5 = vpop.f32.mrb[44].mxu0 }
 0xef0   : > { %v2473_v54 = vadd.f32 %v2472_v5, %v2351_v6  ;;  %v2474_v55 = vpop.f32.mrb[45].mxu0 }
 0xef1   : > { %v2475_v60 = vadd.f32 %v2474_v55, %v2355_v59  ;;  %v2476_v61 = vpop.f32.mrb[46].mxu0 }
 0xef2   : > { %v2477_v23 = vadd.f32 %v2476_v61, %v2351_v6  ;;  %v2478_v62 = vpop.f32.mrb[47].mxu0  ;;  %v2491_v0 = vmax.f32 %v2473_v54, 0.0 }
 0xef3   : > { %v2479_v21 = vadd.f32 %v2478_v62, %v2355_v59  ;;  %v2492_v7 = vmax.f32 %v2475_v60, 0.0 }
 0xef4   : > { %v2493_v4 = vmax.f32 %v2477_v23, 0.0 }
 0xef5   : > { %v2494_v8 = vmax.f32 %v2479_v21, 0.0 }
 0xef6   : > { %v2499_v9 = vpack.c.bf16 %v2493_v4, %v2491_v0 }
 0xef7   : > { %v2500_v10 = vpack.c.bf16 %v2494_v8, %v2492_v7  ;;  %v2482_v11 = vpop.f32.mrb[48].mxu0 }
 0xef8   : > { %v2483_v31 = vadd.f32 %v2482_v11, %v2351_v6  ;;  %v2484_v30 = vpop.f32.mrb[49].mxu0  ;;  %v3250_v11 = vld [vmem:[%s787_s9] ss:$0 sm:$0xff] }
 0xef9   : > { %v2485_v52 = vadd.f32 %v2484_v30, %v2355_v59  ;;  %v2486_v29 = vpop.f32.mrb[50].mxu0  ;;  %2670 = vmatprep.mubr.bf16.mxu1 %v2500_v10 }
 0xefa   : > { %v2487_v32 = vadd.f32 %v2486_v29, %v2351_v6  ;;  %v2488_v12 = vpop.f32.mrb[51].mxu0  ;;  %2671 = vmatmul.mubr.bf16.vlgmr.msra.gmra.mrb[36].mxu1 %v2499_v9  ;;  %v2495_v47 = vmax.f32 %v2483_v31, 0.0 }
 0xefb   : > { %v2489_v13 = vadd.f32 %v2488_v12, %v2355_v59  ;;  %v2496_v40 = vmax.f32 %v2485_v52, 0.0  ;;  %v3251_v52 = vld [vmem:[%s790_s5] ss:$0 sm:$0xff] }
 0xefc   : > { %v2497_v49 = vmax.f32 %v2487_v32, 0.0 }
 0xefd   : > { %v2498_v50 = vmax.f32 %v2489_v13, 0.0 }
 0xefe   : > { %v2501_v63 = vpack.c.bf16 %v2497_v49, %v2495_v47 }
 0xeff   : > { %v2502_v38 = vpack.c.bf16 %v2498_v50, %v2496_v40 }
 0xf01   : > { %2678 = vmatprep.mubr.bf16.mxu1 %v2502_v38 }
 0xf02   : > { %2679 = vmatmul.mubr.bf16.gmra.mrb[40].mxu1 %v2501_v63 }
 0xfcd   : > { %v3338_v1 = vpop.f32.mrb[36].mxu1 }
 0xfce   : > { %v3339_v14 = vpop.f32.mrb[37].mxu1 }
 0xfcf   : > { %v3340_v15 = vadd.f32 %v3339_v14, %v3338_v1  ;;  %v3341_v16 = vpop.f32.mrb[38].mxu1 }
 0xfd0   : > { %v3342_v17 = vpop.f32.mrb[39].mxu1 }
 0xfd1   : > { %v2673_v18 = vadd.f32 %v3340_v15, %v3233_v2  ;;  %v3343_v19 = vadd.f32 %v3342_v17, %v3341_v16  ;;  %v3822_v15 = vld [vmem:[#allocation8] sm:$0xff] (!%p3252_p6)   ;;  %v3823_v17 = vld [vmem:[#allocation8 + $0x8] sm:$0xff] (!%p3252_p6)  }
 0xfd2   : > { %3496 = vmatprep.subr.bf16.mxu0 (!%p3252_p6), %v3822_v15 }
 0xfd3   : > { %v2676_v20 = vadd.f32 %v3343_v19, %v3233_v2  ;;  %v2687_v22 = vadd.f32 %v2673_v18, %v4804_v35  ;;  %3497 = vmatpush3.bf16.msra.mxu0 (!%p3252_p6), %v3822_v15  ;;  %v3824_v18 = vld [vmem:[#allocation8 + $0x10] sm:$0xff] (!%p3252_p6)   ;;  %v3825_v19 = vld [vmem:[#allocation8 + $0x18] sm:$0xff] (!%p3252_p6)  }
 0xfd4   : > { %3498 = vmatprep.subr.bf16.mxu0 (!%p3252_p6), %v3823_v17 }
 0xfd5   : > { %v3344_v24 = vpop.f32.mrb[40].mxu1  ;;  %2693 = vadd.xlane.f32.xlu0 %v2687_v22  ;;  %v2688_v25 = vadd.f32 %v2676_v20, %v4806_v36  ;;  %v3826_v20 = vld [vmem:[#allocation8 + $0x20] sm:$0xff] (!%p3252_p6)  }
 0xfd6   : > { %v3345_v26 = vpop.f32.mrb[41].mxu1 }
 0xfd7   : > { %v3346_v27 = vadd.f32 %v3345_v26, %v3344_v24  ;;  %v3347_v28 = vpop.f32.mrb[42].mxu1  ;;  %2695 = vadd.xlane.f32.xlu1 %v2688_v25  ;;  %3499 = vmatpush3.bf16.msra.mxu0 (!%p3252_p6), %v3823_v17  ;;  %v3828_v24 = vld [vmem:[#allocation8 + $0x30] sm:$0xff] (!%p3252_p6)  }
 0xfd8   : > { %v3348_v33 = vpop.f32.mrb[43].mxu1  ;;  %3500 = vmatprep.subr.bf16.mxu0 (!%p3252_p6), %v3824_v18 }
 0xfd9   : > { %v2681_v34 = vadd.f32 %v3346_v27, %v3233_v2  ;;  %v3349_v37 = vadd.f32 %v3348_v33, %v3347_v28  ;;  %v3253_v27 = vld [vmem:[#allocation10] ss:$0 sm:$0xff] (!%p3252_p6) }
 0xfdb   : > { %v2684_v39 = vadd.f32 %v3349_v37, %v3233_v2  ;;  %v2689_v41 = vadd.f32 %v2681_v34, %v4815_v51  ;;  %3501 = vmatpush3.bf16.msra.mxu0 (!%p3252_p6), %v3824_v18 }
 0xfdc   : > { %3502 = vmatprep.subr.bf16.mxu0 (!%p3252_p6), %v3825_v19 }
 0xfdd   : > { %2697 = vadd.xlane.f32.xlu0 %v2689_v41  ;;  %v2690_v42 = vadd.f32 %v2684_v39, %v4813_v46 }
 0xfdf   : > { %2699 = vadd.xlane.f32.xlu1 %v2690_v42  ;;  %3503 = vmatpush3.bf16.msra.mxu0 (!%p3252_p6), %v3825_v19 }
 0xfe0   : > { %3504 = vmatprep.subr.bf16.mxu0 (!%p3252_p6), %v3826_v20 }
 0xfe3   : > { %3505 = vmatpush3.bf16.msra.mxu0 (!%p3252_p6), %v3826_v20 }
0x1062   : > { %v2694_v45 = vpop.xlane.xlu0 %2693 }
0x1063   : > { %v2701_v35 = vmul.f32 0.0078125, %v2694_v45 }
0x1064   : > { %v2696_v44 = vpop.xlane.xlu1 %2695 }
0x1065   : > { %v2705_v48 = vsub.f32 %v2687_v22, %v2701_v35  ;;  %v2702_v53 = vmul.f32 0.0078125, %v2696_v44  ;;  %v3827_v22 = vld [vmem:[#allocation8 + $0x28] sm:$0xff] (!%p3252_p6)  }
0x1066   : > { %3506 = vmatprep.subr.bf16.mxu0 (!%p3252_p6), %v3827_v22 }
0x1067   : > { %v2706_v36 = vsub.f32 %v2688_v25, %v2702_v53  ;;  %v2709_v56 = vmul.f32 %v2705_v48, %v2705_v48  ;;  %3507 = vmatpush3.bf16.msra.mxu0 (!%p3252_p6), %v3827_v22  ;;  %v3829_v25 = vld [vmem:[#allocation8 + $0x38] sm:$0xff] (!%p3252_p6)  }
0x1068   : > { %3508 = vmatprep.subr.bf16.mxu0 (!%p3252_p6), %v3828_v24 }
0x1069   : > { %2713 = vadd.xlane.f32.xlu0 %v2709_v56  ;;  %v2710_v57 = vmul.f32 %v2706_v36, %v2706_v36 }
0x106a   : > { %v2698_v58 = vpop.xlane.xlu0 %2697 }
0x106b   : > { %v2703_v3 = vmul.f32 0.0078125, %v2698_v58  ;;  %2715 = vadd.xlane.f32.xlu1 %v2710_v57  ;;  %3509 = vmatpush3.bf16.msra.mxu0 (!%p3252_p6), %v3828_v24 }
0x106c   : > { %v2700_v43 = vpop.xlane.xlu1 %2699  ;;  %3510 = vmatprep.subr.bf16.mxu0 (!%p3252_p6), %v3829_v25 }
0x106d   : > { %v2707_v6 = vsub.f32 %v2689_v41, %v2703_v3  ;;  %v2704_v59 = vmul.f32 0.0078125, %v2700_v43 }
0x106f   : > { %v2708_v51 = vsub.f32 %v2690_v42, %v2704_v59  ;;  %v2711_v5 = vmul.f32 %v2707_v6, %v2707_v6  ;;  %3511 = vmatpush3.bf16.msra.mxu0 (!%p3252_p6), %v3829_v25 }
0x1071   : > { %2717 = vadd.xlane.f32.xlu0 %v2711_v5  ;;  %v2712_v46 = vmul.f32 %v2708_v51, %v2708_v51 }
0x1073   : > { %2719 = vadd.xlane.f32.xlu1 %v2712_v46 }
0x10f6   : > { %v2714_v54 = vpop.xlane.xlu0 %2713 }
0x10f7   : > { %v2721_v55 = vmul.f32 0.0078125, %v2714_v54 }
0x10f8   : > { %v2716_v60 = vpop.xlane.xlu1 %2715 }
0x10f9   : > { %v2725_v61 = vadd.f32 1e-05, %v2721_v55  ;;  %v2722_v23 = vmul.f32 0.0078125, %v2716_v60 }
0x10fb   : > { %3810 = vrsqrt.f32 %v2725_v61  ;;  %v2726_v62 = vadd.f32 1e-05, %v2722_v23 }
0x10fd   : > { %3812 = vrsqrt.f32 %v2726_v62 }
0x10fe   : > { %v2718_v21 = vpop.xlane.xlu0 %2717 }
0x10ff   : > { %v2723_v0 = vmul.f32 0.0078125, %v2718_v21 }
0x1100   : > { %v2720_v4 = vpop.xlane.xlu1 %2719 }
0x1101   : > { %v2727_v7 = vadd.f32 1e-05, %v2723_v0  ;;  %v2724_v8 = vmul.f32 0.0078125, %v2720_v4 }
0x1103   : > { %3814 = vrsqrt.f32 %v2727_v7  ;;  %v2728_v9 = vadd.f32 1e-05, %v2724_v8 }
0x1105   : > { %v3811_v10 = vpop.eup %3810  ;;  %3816 = vrsqrt.f32 %v2728_v9 }
0x1106   : > { %v2733_v31 = vmul.f32 %v3811_v10, %v2705_v48 }
0x1107   : > { %v3813_v30 = vpop.eup %3812 }
0x1108   : > { %v2743_v29 = vmul.f32 %v3250_v11, %v2733_v31  ;;  %v2734_v32 = vmul.f32 %v3813_v30, %v2706_v36 }
0x110a   : > { %v2753_v12 = vadd.f32 %v3251_v52, %v2743_v29  ;;  %v2744_v13 = vmul.f32 %v3250_v11, %v2734_v32 }
0x110c   : > { %2757 = vst [vmem:[#allocation2] sm:$0xff] %v2753_v12  ;;  %v2754_v47 = vadd.f32 %v3251_v52, %v2744_v13 }
0x110d   : > { %v3815_v49 = vpop.eup %3814 }
0x110e   : > { %2758 = vst [vmem:[#allocation2 + $0x8] sm:$0xff] %v2754_v47  ;;  %v2735_v40 = vmul.f32 %v3815_v49, %v2707_v6  ;;  %v2765_v16 = vpack.c.bf16 (!%p3252_p6), %v2754_v47, %v2753_v12 }
0x110f   : > { %v3817_v50 = vpop.eup %3816 }
0x1110   : > { %v2745_v63 = vmul.f32 %v3250_v11, %v2735_v40  ;;  %v2736_v38 = vmul.f32 %v3817_v50, %v2708_v51  ;;  %2764 = sbr.rel (%p3252_p6) target bundleno = 4594 (0x11f2), region = 108  ;;  %3512 = vmatprep.mubr.bf16.mxu0 (!%p3252_p6), %v2765_v16 }
0x1112   : > { %v2755_v1 = vadd.f32 %v3251_v52, %v2745_v63  ;;  %v2746_v2 = vmul.f32 %v3250_v11, %v2736_v38 }
0x1114   : > { %2759 = vst [vmem:[#allocation2 + $0x10] sm:$0xff] %v2755_v1  ;;  %v2756_v14 = vadd.f32 %v3251_v52, %v2746_v2 }
0x1116   : > { %2760 = vst [vmem:[#allocation2 + $0x18] sm:$0xff] %v2756_v14  ;;  %v2766_v26 = vpack.c.bf16 (!%p3252_p6), %v2756_v14, %v2755_v1 }
0x1118   : > { %3513 = vmatmul.mubr.bf16.vlgmr.msra.gmra.mrb[0].mxu0 %v2766_v26 }
0x11eb   : > { %v3514_v28 = vpop.f32.mrb[0].mxu0 }
0x11ec   : > { %v2872_v33 = vpop.f32.mrb[1].mxu0  ;;  %v2881_v39 = vadd.f32 %v3514_v28, %v3253_v27 }
0x11ed   : > { %v2873_v34 = vadd.f32 %v3253_v27, %v2872_v33  ;;  %v3515_v37 = vpop.f32.mrb[2].mxu0 }
0x11ee   : > { %v2875_v41 = vpop.f32.mrb[3].mxu0  ;;  %2889 = vst [vmem:[%s4455_s25 + $0x10] sm:$0xff] %v2881_v39  ;;  %v2884_v45 = vadd.f32 %v3515_v37, %v3253_v27 }
0x11ef   : > { %2887 = vst [vmem:[%s4455_s25] sm:$0xff] %v2873_v34  ;;  %v2876_v42 = vadd.f32 %v3253_v27, %v2875_v41 }
0x11f0   : > { %2890 = vst [vmem:[%s4455_s25 + $0x18] sm:$0xff] %v2884_v45 }
0x11f1   : > { %2888 = vst [vmem:[%s4455_s25 + $0x8] sm:$0xff] %v2876_v42 }
0x11f2 PF: > { %s4974_s21 = sld [smem:[#allocation18_spill]]  ;;  %s4975_s18 = sld [smem:[#allocation14_spill]] }
0x11f3   : > { %s4976_s19 = sld [smem:[#allocation15_spill]]  ;;  %s4977_s20 = sld [smem:[#allocation21_spill]] }
0x11f4   : > { %s4979_s22 = sld [smem:[#allocation17_spill]]  ;;  %s4980_s23 = sld [smem:[#allocation19_spill]] }
0x11f5   : > { %s4981_s24 = sld [smem:[#allocation20_spill]] }
0x11f8   : > { %s32_s25 = sadd.s32 1, %s4974_s21   ;;  %s4978_s21 = sld [smem:[#allocation16_spill]] }
0x11f9   : > { %p29_p13 = scmp.ge.s32.totalorder %s32_s25, 6  }
0x11fb   :  { %31 = sbr.rel (!%p29_p13) target bundleno = 24 (0x18), region = 190 }
0x1202   :  { %2915 = vsyncpa [#allocation4], 1 }
0x1203   :  { %2917 = vsyncpa [#allocation4 + $0x1], 1 }
0x1204   :  { %2918 = vsyncpa [#allocation6], 1 }
0x1205   :  { %2920 = vsyncpa [#allocation6 + $0x1], 1 }
0x1206   :  { %2921 = vsyncpa [#allocation9], 1 }

</bundles_post_ra>
